<compile_context>
chip_gen: v5e
topology: v5e:2x2
jax: 0.10.0
libtpu: 0.0.40
codegen_flags: <defaults>
</compile_context>

<pallas_src>
import functools

import jax
import jax.numpy as jnp
from jax import lax
from jax.experimental import pallas as pl
from jax.experimental.pallas import tpu as pltpu

LEAKY_SLOPE = 0.2
BN_EPS = 1e-5


def _conv_stats_kernel(*refs, num_phases, stride, kh, kw, th, ho, cout):
    """grid = (batch, band).  Computes `th` output rows of the bias-free conv
    (fused patch extraction from the resident padded image) plus this band's
    partial BN statistics.  Rows past `ho` (band padding) recompute the last
    valid row and are masked out of the statistics."""
    w_ref = refs[0]
    phase_refs = refs[1:1 + num_phases]
    y_ref = refs[1 + num_phases]
    stat_ref = refs[2 + num_phases]

    t = pl.program_id(1)
    wo = y_ref.shape[-1]
    wf = w_ref[...]                                   # (Cout, K), K=(ki,kj,ci)-major

    acc = jnp.zeros((cout, 2), jnp.float32)           # [:, 0]=sum, [:, 1]=sum of sq
    for r in range(th):
        row = t * th + r                              # output row (may exceed ho)
        rowc = jnp.minimum(row, ho - 1)               # clamp -> never reads OOB
        taps = []
        for ki in range(kh):
            rin = stride * rowc + ki                  # padded-input row (untiled dim)
            for kj in range(kw):
                ph, off = kj % stride, kj // stride   # width phase + unit-stride col
                taps.append(phase_refs[ph][0, rin, :, pl.ds(off, wo)])   # (Cin, Wo)
        patch = jnp.concatenate(taps, axis=0)                             # (K, Wo)
        yr = jnp.dot(wf, patch, preferred_element_type=jnp.float32)       # (Cout, Wo)
        y_ref[0, r, :, :] = yr

        m = jnp.where(row < ho, 1.0, 0.0)             # mask padded rows out of stats
        srow = jnp.sum(yr, axis=1, keepdims=True)
        sqrow = jnp.sum(yr * yr, axis=1, keepdims=True)
        acc = acc + m * jnp.concatenate([srow, sqrow], axis=1)

    stat_ref[...] = acc.reshape(1, 1, cout, 2)


def _bn_lrelu_kernel(y_ref, scale_ref, shift_ref, o_ref):
    """Fused BN affine (hoisted per-channel scale/shift) + LeakyReLU(0.2)."""
    z = y_ref[...] * scale_ref[...] + shift_ref[...]
    o_ref[...] = jnp.where(z >= 0.0, z, LEAKY_SLOPE * z)


def _conv_bn_lrelu_block(xp, conv_w, gamma, beta, *, stride, band_rows=8):
    """Conv2d(stride, VALID, bias dropped) -> train-mode BN -> LeakyReLU(0.2).

    xp is the reflection-padded activation in (N, Hp, Cin, Wp) layout; returns
    the activation in (N, Ho, Cout, Wo) layout.
    """
    N, Hp, Cin, Wp = xp.shape
    Cout, Cin_w, KH, KW = conv_w.shape
    assert Cin_w == Cin, (Cin_w, Cin)
    Ho = (Hp - KH) // stride + 1
    Wo = (Wp - KW) // stride + 1
    M = N * Ho * Wo
    K = KH * KW * Cin

    TH = max(int(band_rows), 1)                   # output rows per grid step
    num_bands = pl.cdiv(Ho, TH)
    Ho_pad = num_bands * TH

    # Width-phase split so every in-kernel lane read is a unit-stride slice
    # (for stride=1 this is a no-op view; for stride=2 it is one cheap pass
    # over the *smallest* tensor in the pipeline).
    phases = [xp[..., j::stride] for j in range(stride)]
    for kj in range(KW):                          # every tap must fit its phase array
        assert kj // stride + Wo <= phases[kj % stride].shape[-1]

    # Flatten the weight to (Cout, K) with K ordered (ki, kj, ci) to match the
    # in-kernel tap concatenation order.
    wf = jnp.transpose(conv_w, (0, 2, 3, 1)).reshape(Cout, K).astype(jnp.float32)

    conv_kernel = functools.partial(
        _conv_stats_kernel, num_phases=len(phases), stride=stride,
        kh=KH, kw=KW, th=TH, ho=Ho, cout=Cout)

    in_specs = [pl.BlockSpec((Cout, K), lambda n, t: (0, 0))]
    for ph in phases:
        wj = ph.shape[-1]
        # Whole padded image of one batch element stays resident across bands
        # => each input byte is DMA'd from HBM exactly once per TensorCore.
        in_specs.append(pl.BlockSpec((1, Hp, Cin, wj), lambda n, t: (n, 0, 0, 0)))

    # VMEM estimate (double-buffered resident image + one output band).  Only
    # raise the scoped limit when actually needed; cap at 96 MiB (v5e/v6e have
    # 128 MiB physical VMEM; v7x has 64 MiB and fits easily at these sizes).
    need_bytes = 4 * (2 * Cin * Hp * Wp + 2 * Cout * K
                      + 2 * TH * Cout * Wo + 2 * Cout * 2)
    cp_kwargs = dict(dimension_semantics=("parallel", "parallel"))
    if need_bytes > 24 * 1024 * 1024:
        cp_kwargs["vmem_limit_bytes"] = min(int(need_bytes * 3 // 2),
                                            96 * 1024 * 1024)

    y, partials = pl.pallas_call(
        conv_kernel,
        grid=(N, num_bands),
        in_specs=in_specs,
        out_specs=(pl.BlockSpec((1, TH, Cout, Wo), lambda n, t: (n, t, 0, 0)),
                   pl.BlockSpec((1, 1, Cout, 2), lambda n, t: (n, t, 0, 0))),
        out_shape=(jax.ShapeDtypeStruct((N, Ho_pad, Cout, Wo), jnp.float32),
                   jax.ShapeDtypeStruct((N, num_bands, Cout, 2), jnp.float32)),
        compiler_params=pltpu.CompilerParams(**cp_kwargs),
        cost_estimate=pl.CostEstimate(
            flops=2 * N * Ho_pad * Wo * K * Cout,
            transcendentals=0,
            bytes_accessed=4 * (N * Cin * Hp * Wp + N * Ho_pad * Cout * Wo
                                + N * num_bands * Cout * 2 + Cout * K)),
    )(wf, *phases)

    # --- tiny JAX reduction of per-band partial statistics (parallel-variance
    # combine: per-band M2 + between-band term; avoids large-scale E[y^2]-mean^2
    # cancellation flagged in the review).
    bs = partials[..., 0]                                        # (N, B, Cout)
    bss = partials[..., 1]                                       # (N, B, Cout)
    cnt = (jnp.clip(Ho - jnp.arange(num_bands) * TH, 0, TH) * Wo
           ).astype(jnp.float32)[None, :, None]                  # (1, B, 1)
    mean = jnp.sum(bs, axis=(0, 1)) / M                          # (Cout,)
    within = bss - bs * bs / cnt
    between = cnt * (bs / cnt - mean) ** 2
    var = (jnp.sum(within, axis=(0, 1)) + jnp.sum(between, axis=(0, 1))) / M
    var = jnp.maximum(var, 0.0)
    scale = gamma.astype(jnp.float32) * lax.rsqrt(var + BN_EPS)
    shift = beta.astype(jnp.float32) - mean * scale

    out = pl.pallas_call(
        _bn_lrelu_kernel,
        grid=(N, num_bands),
        in_specs=[pl.BlockSpec((1, TH, Cout, Wo), lambda n, t: (n, t, 0, 0)),
                  pl.BlockSpec((1, 1, Cout, 1), lambda n, t: (0, 0, 0, 0)),
                  pl.BlockSpec((1, 1, Cout, 1), lambda n, t: (0, 0, 0, 0))],
        out_specs=pl.BlockSpec((1, TH, Cout, Wo), lambda n, t: (n, t, 0, 0)),
        out_shape=jax.ShapeDtypeStruct((N, Ho_pad, Cout, Wo), jnp.float32),
        compiler_params=pltpu.CompilerParams(
            dimension_semantics=("parallel", "parallel")),
    )(y, scale.reshape(1, 1, Cout, 1), shift.reshape(1, 1, Cout, 1))

    return out[:, :Ho]                        # drop band-padding rows


def downsample_forward(x_nchw, conv1_w, conv1_b, conv2_w, conv2_b,
                       bn_gamma, bn_beta, pad_size, band_rows=8):
    """Forward pass of DownsampleModule (train-mode BN, shared gamma/beta)."""
    # Conv biases are accepted for parity with the PyTorch module but NOT used:
    # a per-channel constant added before train-mode BatchNorm cancels in (y-mean).
    del conv1_b, conv2_b

    def reflect_pad_nhcw(a):                  # pad H (dim 1) and W (dim 3)
        return jnp.pad(a, ((0, 0), (pad_size, pad_size), (0, 0),
                           (pad_size, pad_size)), mode="reflect")

    # Single layout change at module entry: NCHW -> (N, H, C, W) so H is an
    # untiled dim and (C, W) is the natural (sublane, lane) tile for the fused
    # in-kernel patch reads.  The activation stays in this layout between the
    # two blocks (no NCHW<->NHWC round trips).
    x_nhcw = jnp.transpose(x_nchw, (0, 2, 1, 3))
    a1 = _conv_bn_lrelu_block(reflect_pad_nhcw(x_nhcw), conv1_w, bn_gamma, bn_beta,
                              stride=2, band_rows=band_rows)
    a2 = _conv_bn_lrelu_block(reflect_pad_nhcw(a1), conv2_w, bn_gamma, bn_beta,
                              stride=1, band_rows=band_rows)
    # TODO(synk): fold this final transpose into the last normalize kernel.
    return jnp.transpose(a2, (0, 2, 1, 3))    # back to NCHW (module contract)


def _reference_forward(x, w1, b1, w2, b2, gamma, beta, pad_size):
    """Pure-JAX reference matching PyTorch semantics (keeps the conv biases)."""
    def block(x, w, b, stride):
        xp = jnp.pad(x, ((0, 0), (0, 0), (pad_size, pad_size), (pad_size, pad_size)),
                     mode="reflect")
        y = lax.conv_general_dilated(
            xp, w, window_strides=(stride, stride), padding="VALID",
            dimension_numbers=("NCHW", "OIHW", "NCHW"))
        y = y + b[None, :, None, None]
        mean = jnp.mean(y, axis=(0, 2, 3), keepdims=True)
        var = jnp.mean((y - mean) ** 2, axis=(0, 2, 3), keepdims=True)
        yhat = (y - mean) * lax.rsqrt(var + BN_EPS)
        y = yhat * gamma[None, :, None, None] + beta[None, :, None, None]
        return jnp.where(y >= 0.0, y, LEAKY_SLOPE * y)

    return block(block(x, w1, b1, stride=2), w2, b2, stride=1)


if __name__ == "__main__":
    # DownsampleModule(input_depth=4, num_filters=8, kernel_size=3, pad_size=1)
    N, Cin, H, W = 2, 4, 16, 16
    Cout, KH, KW, PAD = 8, 3, 3, 1

    key = jax.random.PRNGKey(0)
    kx, k1, kb1, k2, kb2, kg, kb = jax.random.split(key, 7)
    x = jax.random.normal(kx, (N, Cin, H, W), dtype=jnp.float32)
    conv1_w = jax.random.normal(k1, (Cout, Cin, KH, KW), dtype=jnp.float32) * 0.1
    conv1_b = jax.random.normal(kb1, (Cout,), dtype=jnp.float32) * 0.1
    conv2_w = jax.random.normal(k2, (Cout, Cout, KH, KW), dtype=jnp.float32) * 0.1
    conv2_b = jax.random.normal(kb2, (Cout,), dtype=jnp.float32) * 0.1
    # Non-trivial affine params (instead of BatchNorm2d's default 1/0 init) so
    # the fused scale/shift path is actually exercised.
    bn_gamma = 1.0 + 0.1 * jax.random.normal(kg, (Cout,), dtype=jnp.float32)
    bn_beta = 0.1 * jax.random.normal(kb, (Cout,), dtype=jnp.float32)

    out = downsample_forward(x, conv1_w, conv1_b, conv2_w, conv2_b,
                             bn_gamma, bn_beta, PAD)
    out = jax.block_until_ready(out)
    ref = _reference_forward(x, conv1_w, conv1_b, conv2_w, conv2_b,
                             bn_gamma, bn_beta, PAD)
    assert out.shape == (N, Cout, 8, 8), out.shape
    assert jnp.allclose(out, ref, atol=2e-4, rtol=2e-4), \
        float(jnp.max(jnp.abs(out - ref)))

    # Second check: odd output height (17) so Ho is not a multiple of the band
    # height, exercising the clamped/masked padded-row path and the multi-band
    # parallel-variance combine.
    x2 = jax.random.normal(jax.random.PRNGKey(1), (N, Cin, 34, 34), jnp.float32)
    out2 = jax.block_until_ready(
        downsample_forward(x2, conv1_w, conv1_b, conv2_w, conv2_b,
                           bn_gamma, bn_beta, PAD))
    ref2 = _reference_forward(x2, conv1_w, conv1_b, conv2_w, conv2_b,
                              bn_gamma, bn_beta, PAD)
    assert out2.shape == ref2.shape, (out2.shape, ref2.shape)
    assert jnp.allclose(out2, ref2, atol=2e-4, rtol=2e-4), \
        float(jnp.max(jnp.abs(out2 - ref2)))

    print("KERNEL_OK")
</pallas_src>

<mosaic_0001>
module attributes {stable_mosaic.version = 11 : i64} {
  func.func @_conv_stats_kernel(%arg0: i32, %arg1: i32, %arg2: memref<8x36xf32, #tpu.memory_space<vmem>>, %arg3: memref<1x18x4x9xf32, #tpu.memory_space<vmem>>, %arg4: memref<1x18x4x9xf32, #tpu.memory_space<vmem>>, %arg5: memref<1x8x8x8xf32, #tpu.memory_space<vmem>>, %arg6: memref<1x1x8x2xf32, #tpu.memory_space<vmem>>) attributes {dimension_semantics = [#tpu.dimension_semantics<parallel>, #tpu.dimension_semantics<parallel>], iteration_bounds = array<i64: 2, 1>, scalar_prefetch = 0 : i64, scratch_operands = 0 : i64, tpu.core_type = #tpu.core_type<tc>, window_params = [{pipeline_mode = #tpu.pipeline_mode<synchronous>, transform_indices = @transform_0, window_bounds = array<i64: 8, 36>}, {transform_indices = @transform_1, window_bounds = array<i64: 1, 18, 4, 9>}, {transform_indices = @transform_2, window_bounds = array<i64: 1, 18, 4, 9>}, {transform_indices = @transform_3, window_bounds = array<i64: 1, 8, 8, 8>}, {transform_indices = @transform_4, window_bounds = array<i64: 1, 1, 8, 2>}]} {
    %c0 = arith.constant 0 : index
    %c0_0 = arith.constant 0 : index
    %0 = vector.load %arg2[%c0, %c0_0] : memref<8x36xf32, #tpu.memory_space<vmem>>, vector<8x36xf32>
    %cst = arith.constant 0.000000e+00 : f32
    %1 = vector.broadcast %cst : f32 to vector<8x2xf32>
    %c8_i32 = arith.constant 8 : i32
    %2 = arith.muli %arg1, %c8_i32 : i32
    %c0_i32 = arith.constant 0 : i32
    %3 = arith.addi %2, %c0_i32 : i32
    %c7_i32 = arith.constant 7 : i32
    %4 = arith.minsi %3, %c7_i32 : i32
    %c2_i32 = arith.constant 2 : i32
    %5 = arith.muli %c2_i32, %4 : i32
    %c0_i32_1 = arith.constant 0 : i32
    %6 = arith.addi %5, %c0_i32_1 : i32
    %c0_2 = arith.constant 0 : index
    %7 = arith.index_cast %6 : i32 to index
    %c0_3 = arith.constant 0 : index
    %c0_4 = arith.constant 0 : index
    %8 = vector.load %arg3[%c0_2, %7, %c0_3, %c0_4] : memref<1x18x4x9xf32, #tpu.memory_space<vmem>>, vector<1x1x4x8xf32>
    %9 = vector.shape_cast %8 : vector<1x1x4x8xf32> to vector<4x8xf32>
    %c0_5 = arith.constant 0 : index
    %10 = arith.index_cast %6 : i32 to index
    %c0_6 = arith.constant 0 : index
    %c0_7 = arith.constant 0 : index
    %11 = vector.load %arg4[%c0_5, %10, %c0_6, %c0_7] : memref<1x18x4x9xf32, #tpu.memory_space<vmem>>, vector<1x1x4x8xf32>
    %12 = vector.shape_cast %11 : vector<1x1x4x8xf32> to vector<4x8xf32>
    %c0_8 = arith.constant 0 : index
    %13 = arith.index_cast %6 : i32 to index
    %c0_9 = arith.constant 0 : index
    %c1 = arith.constant 1 : index
    %14 = vector.load %arg3[%c0_8, %13, %c0_9, %c1] : memref<1x18x4x9xf32, #tpu.memory_space<vmem>>, vector<1x1x4x8xf32>
    %15 = vector.shape_cast %14 : vector<1x1x4x8xf32> to vector<4x8xf32>
    %c2_i32_10 = arith.constant 2 : i32
    %16 = arith.muli %c2_i32_10, %4 : i32
    %c1_i32 = arith.constant 1 : i32
    %17 = arith.addi %16, %c1_i32 : i32
    %c0_11 = arith.constant 0 : index
    %18 = arith.index_cast %17 : i32 to index
    %c0_12 = arith.constant 0 : index
    %c0_13 = arith.constant 0 : index
    %19 = vector.load %arg3[%c0_11, %18, %c0_12, %c0_13] : memref<1x18x4x9xf32, #tpu.memory_space<vmem>>, vector<1x1x4x8xf32>
    %20 = vector.shape_cast %19 : vector<1x1x4x8xf32> to vector<4x8xf32>
    %c0_14 = arith.constant 0 : index
    %21 = arith.index_cast %17 : i32 to index
    %c0_15 = arith.constant 0 : index
    %c0_16 = arith.constant 0 : index
    %22 = vector.load %arg4[%c0_14, %21, %c0_15, %c0_16] : memref<1x18x4x9xf32, #tpu.memory_space<vmem>>, vector<1x1x4x8xf32>
    %23 = vector.shape_cast %22 : vector<1x1x4x8xf32> to vector<4x8xf32>
    %c0_17 = arith.constant 0 : index
    %24 = arith.index_cast %17 : i32 to index
    %c0_18 = arith.constant 0 : index
    %c1_19 = arith.constant 1 : index
    %25 = vector.load %arg3[%c0_17, %24, %c0_18, %c1_19] : memref<1x18x4x9xf32, #tpu.memory_space<vmem>>, vector<1x1x4x8xf32>
    %26 = vector.shape_cast %25 : vector<1x1x4x8xf32> to vector<4x8xf32>
    %c2_i32_20 = arith.constant 2 : i32
    %27 = arith.muli %c2_i32_20, %4 : i32
    %c2_i32_21 = arith.constant 2 : i32
    %28 = arith.addi %27, %c2_i32_21 : i32
    %c0_22 = arith.constant 0 : index
    %29 = arith.index_cast %28 : i32 to index
    %c0_23 = arith.constant 0 : index
    %c0_24 = arith.constant 0 : index
    %30 = vector.load %arg3[%c0_22, %29, %c0_23, %c0_24] : memref<1x18x4x9xf32, #tpu.memory_space<vmem>>, vector<1x1x4x8xf32>
    %31 = vector.shape_cast %30 : vector<1x1x4x8xf32> to vector<4x8xf32>
    %c0_25 = arith.constant 0 : index
    %32 = arith.index_cast %28 : i32 to index
    %c0_26 = arith.constant 0 : index
    %c0_27 = arith.constant 0 : index
    %33 = vector.load %arg4[%c0_25, %32, %c0_26, %c0_27] : memref<1x18x4x9xf32, #tpu.memory_space<vmem>>, vector<1x1x4x8xf32>
    %34 = vector.shape_cast %33 : vector<1x1x4x8xf32> to vector<4x8xf32>
    %c0_28 = arith.constant 0 : index
    %35 = arith.index_cast %28 : i32 to index
    %c0_29 = arith.constant 0 : index
    %c1_30 = arith.constant 1 : index
    %36 = vector.load %arg3[%c0_28, %35, %c0_29, %c1_30] : memref<1x18x4x9xf32, #tpu.memory_space<vmem>>, vector<1x1x4x8xf32>
    %37 = vector.shape_cast %36 : vector<1x1x4x8xf32> to vector<4x8xf32>
    %38 = tpu.concatenate %9, %12, %15, %20, %23, %26, %31, %34, %37 in 0 : vector<4x8xf32>, vector<4x8xf32>, vector<4x8xf32>, vector<4x8xf32>, vector<4x8xf32>, vector<4x8xf32>, vector<4x8xf32>, vector<4x8xf32>, vector<4x8xf32> -> vector<36x8xf32>
    %cst_31 = arith.constant dense<0.000000e+00> : vector<8x8xf32>
    %39 = tpu.matmul %0, %38, %cst_31 {dimension_numbers = #tpu.dot_dimension_numbers<[1], [0], [0], [1], [0, 0, 1, 1], [], []>} : vector<8x36xf32>, vector<36x8xf32>, vector<8x8xf32> -> vector<8x8xf32>
    %c0_32 = arith.constant 0 : index
    %c0_33 = arith.constant 0 : index
    %c0_34 = arith.constant 0 : index
    %c0_35 = arith.constant 0 : index
    %40 = vector.load %arg5[%c0_32, %c0_33, %c0_34, %c0_35] : memref<1x8x8x8xf32, #tpu.memory_space<vmem>>, vector<1x1x8x8xf32>
    %41 = vector.shape_cast %40 : vector<1x1x8x8xf32> to vector<8x8xf32>
    %42 = vector.shape_cast %39 : vector<8x8xf32> to vector<1x1x8x8xf32>
    tpu.vector_store %arg5[%c0_32, %c0_33, %c0_34, %c0_35], %42 {strides = array<i32>} : memref<1x8x8x8xf32, #tpu.memory_space<vmem>>, vector<1x1x8x8xf32>,
    %c8_i32_36 = arith.constant 8 : i32
    %43 = arith.cmpi slt, %3, %c8_i32_36 : i32
    %cst_37 = arith.constant 1.000000e+00 : f32
    %cst_38 = arith.constant 0.000000e+00 : f32
    %44 = arith.select %43, %cst_37, %cst_38 : f32
    %cst_39 = arith.constant dense<0.000000e+00> : vector<8xf32>
    %45 = vector.multi_reduction <add>, %39, %cst_39 [1] : vector<8x8xf32> to vector<8xf32>
    %46 = vector.shape_cast %45 : vector<8xf32> to vector<8x1xf32>
    %47 = arith.mulf %39, %39 : vector<8x8xf32>
    %cst_40 = arith.constant dense<0.000000e+00> : vector<8xf32>
    %48 = vector.multi_reduction <add>, %47, %cst_40 [1] : vector<8x8xf32> to vector<8xf32>
    %49 = vector.shape_cast %48 : vector<8xf32> to vector<8x1xf32>
    %50 = tpu.concatenate %46, %49 in 1 : vector<8x1xf32>, vector<8x1xf32> -> vector<8x2xf32>
    %51 = vector.broadcast %44 : f32 to vector<8x2xf32>
    %52 = arith.mulf %51, %50 : vector<8x2xf32>
    %53 = arith.addf %1, %52 : vector<8x2xf32>
    %c8_i32_41 = arith.constant 8 : i32
    %54 = arith.muli %arg1, %c8_i32_41 : i32
    %c1_i32_42 = arith.constant 1 : i32
    %55 = arith.addi %54, %c1_i32_42 : i32
    %c7_i32_43 = arith.constant 7 : i32
    %56 = arith.minsi %55, %c7_i32_43 : i32
    %c2_i32_44 = arith.constant 2 : i32
    %57 = arith.muli %c2_i32_44, %56 : i32
    %c0_i32_45 = arith.constant 0 : i32
    %58 = arith.addi %57, %c0_i32_45 : i32
    %c0_46 = arith.constant 0 : index
    %59 = arith.index_cast %58 : i32 to index
    %c0_47 = arith.constant 0 : index
    %c0_48 = arith.constant 0 : index
    %60 = vector.load %arg3[%c0_46, %59, %c0_47, %c0_48] : memref<1x18x4x9xf32, #tpu.memory_space<vmem>>, vector<1x1x4x8xf32>
    %61 = vector.shape_cast %60 : vector<1x1x4x8xf32> to vector<4x8xf32>
    %c0_49 = arith.constant 0 : index
    %62 = arith.index_cast %58 : i32 to index
    %c0_50 = arith.constant 0 : index
    %c0_51 = arith.constant 0 : index
    %63 = vector.load %arg4[%c0_49, %62, %c0_50, %c0_51] : memref<1x18x4x9xf32, #tpu.memory_space<vmem>>, vector<1x1x4x8xf32>
    %64 = vector.shape_cast %63 : vector<1x1x4x8xf32> to vector<4x8xf32>
    %c0_52 = arith.constant 0 : index
    %65 = arith.index_cast %58 : i32 to index
    %c0_53 = arith.constant 0 : index
    %c1_54 = arith.constant 1 : index
    %66 = vector.load %arg3[%c0_52, %65, %c0_53, %c1_54] : memref<1x18x4x9xf32, #tpu.memory_space<vmem>>, vector<1x1x4x8xf32>
    %67 = vector.shape_cast %66 : vector<1x1x4x8xf32> to vector<4x8xf32>
    %c2_i32_55 = arith.constant 2 : i32
    %68 = arith.muli %c2_i32_55, %56 : i32
    %c1_i32_56 = arith.constant 1 : i32
    %69 = arith.addi %68, %c1_i32_56 : i32
    %c0_57 = arith.constant 0 : index
    %70 = arith.index_cast %69 : i32 to index
    %c0_58 = arith.constant 0 : index
    %c0_59 = arith.constant 0 : index
    %71 = vector.load %arg3[%c0_57, %70, %c0_58, %c0_59] : memref<1x18x4x9xf32, #tpu.memory_space<vmem>>, vector<1x1x4x8xf32>
    %72 = vector.shape_cast %71 : vector<1x1x4x8xf32> to vector<4x8xf32>
    %c0_60 = arith.constant 0 : index
    %73 = arith.index_cast %69 : i32 to index
    %c0_61 = arith.constant 0 : index
    %c0_62 = arith.constant 0 : index
    %74 = vector.load %arg4[%c0_60, %73, %c0_61, %c0_62] : memref<1x18x4x9xf32, #tpu.memory_space<vmem>>, vector<1x1x4x8xf32>
    %75 = vector.shape_cast %74 : vector<1x1x4x8xf32> to vector<4x8xf32>
    %c0_63 = arith.constant 0 : index
    %76 = arith.index_cast %69 : i32 to index
    %c0_64 = arith.constant 0 : index
    %c1_65 = arith.constant 1 : index
    %77 = vector.load %arg3[%c0_63, %76, %c0_64, %c1_65] : memref<1x18x4x9xf32, #tpu.memory_space<vmem>>, vector<1x1x4x8xf32>
    %78 = vector.shape_cast %77 : vector<1x1x4x8xf32> to vector<4x8xf32>
    %c2_i32_66 = arith.constant 2 : i32
    %79 = arith.muli %c2_i32_66, %56 : i32
    %c2_i32_67 = arith.constant 2 : i32
    %80 = arith.addi %79, %c2_i32_67 : i32
    %c0_68 = arith.constant 0 : index
    %81 = arith.index_cast %80 : i32 to index
    %c0_69 = arith.constant 0 : index
    %c0_70 = arith.constant 0 : index
    %82 = vector.load %arg3[%c0_68, %81, %c0_69, %c0_70] : memref<1x18x4x9xf32, #tpu.memory_space<vmem>>, vector<1x1x4x8xf32>
    %83 = vector.shape_cast %82 : vector<1x1x4x8xf32> to vector<4x8xf32>
    %c0_71 = arith.constant 0 : index
    %84 = arith.index_cast %80 : i32 to index
    %c0_72 = arith.constant 0 : index
    %c0_73 = arith.constant 0 : index
    %85 = vector.load %arg4[%c0_71, %84, %c0_72, %c0_73] : memref<1x18x4x9xf32, #tpu.memory_space<vmem>>, vector<1x1x4x8xf32>
    %86 = vector.shape_cast %85 : vector<1x1x4x8xf32> to vector<4x8xf32>
    %c0_74 = arith.constant 0 : index
    %87 = arith.index_cast %80 : i32 to index
    %c0_75 = arith.constant 0 : index
    %c1_76 = arith.constant 1 : index
    %88 = vector.load %arg3[%c0_74, %87, %c0_75, %c1_76] : memref<1x18x4x9xf32, #tpu.memory_space<vmem>>, vector<1x1x4x8xf32>
    %89 = vector.shape_cast %88 : vector<1x1x4x8xf32> to vector<4x8xf32>
    %90 = tpu.concatenate %61, %64, %67, %72, %75, %78, %83, %86, %89 in 0 : vector<4x8xf32>, vector<4x8xf32>, vector<4x8xf32>, vector<4x8xf32>, vector<4x8xf32>, vector<4x8xf32>, vector<4x8xf32>, vector<4x8xf32>, vector<4x8xf32> -> vector<36x8xf32>
    %cst_77 = arith.constant dense<0.000000e+00> : vector<8x8xf32>
    %91 = tpu.matmul %0, %90, %cst_77 {dimension_numbers = #tpu.dot_dimension_numbers<[1], [0], [0], [1], [0, 0, 1, 1], [], []>} : vector<8x36xf32>, vector<36x8xf32>, vector<8x8xf32> -> vector<8x8xf32>
    %c0_78 = arith.constant 0 : index
    %c1_79 = arith.constant 1 : index
    %c0_80 = arith.constant 0 : index
    %c0_81 = arith.constant 0 : index
    %92 = vector.load %arg5[%c0_78, %c1_79, %c0_80, %c0_81] : memref<1x8x8x8xf32, #tpu.memory_space<vmem>>, vector<1x1x8x8xf32>
    %93 = vector.shape_cast %92 : vector<1x1x8x8xf32> to vector<8x8xf32>
    %94 = vector.shape_cast %91 : vector<8x8xf32> to vector<1x1x8x8xf32>
    tpu.vector_store %arg5[%c0_78, %c1_79, %c0_80, %c0_81], %94 {strides = array<i32>} : memref<1x8x8x8xf32, #tpu.memory_space<vmem>>, vector<1x1x8x8xf32>,
    %c8_i32_82 = arith.constant 8 : i32
    %95 = arith.cmpi slt, %55, %c8_i32_82 : i32
    %cst_83 = arith.constant 1.000000e+00 : f32
    %cst_84 = arith.constant 0.000000e+00 : f32
    %96 = arith.select %95, %cst_83, %cst_84 : f32
    %cst_85 = arith.constant dense<0.000000e+00> : vector<8xf32>
    %97 = vector.multi_reduction <add>, %91, %cst_85 [1] : vector<8x8xf32> to vector<8xf32>
    %98 = vector.shape_cast %97 : vector<8xf32> to vector<8x1xf32>
    %99 = arith.mulf %91, %91 : vector<8x8xf32>
    %cst_86 = arith.constant dense<0.000000e+00> : vector<8xf32>
    %100 = vector.multi_reduction <add>, %99, %cst_86 [1] : vector<8x8xf32> to vector<8xf32>
    %101 = vector.shape_cast %100 : vector<8xf32> to vector<8x1xf32>
    %102 = tpu.concatenate %98, %101 in 1 : vector<8x1xf32>, vector<8x1xf32> -> vector<8x2xf32>
    %103 = vector.broadcast %96 : f32 to vector<8x2xf32>
    %104 = arith.mulf %103, %102 : vector<8x2xf32>
    %105 = arith.addf %53, %104 : vector<8x2xf32>
    %c8_i32_87 = arith.constant 8 : i32
    %106 = arith.muli %arg1, %c8_i32_87 : i32
    %c2_i32_88 = arith.constant 2 : i32
    %107 = arith.addi %106, %c2_i32_88 : i32
    %c7_i32_89 = arith.constant 7 : i32
    %108 = arith.minsi %107, %c7_i32_89 : i32
    %c2_i32_90 = arith.constant 2 : i32
    %109 = arith.muli %c2_i32_90, %108 : i32
    %c0_i32_91 = arith.constant 0 : i32
    %110 = arith.addi %109, %c0_i32_91 : i32
    %c0_92 = arith.constant 0 : index
    %111 = arith.index_cast %110 : i32 to index
    %c0_93 = arith.constant 0 : index
    %c0_94 = arith.constant 0 : index
    %112 = vector.load %arg3[%c0_92, %111, %c0_93, %c0_94] : memref<1x18x4x9xf32, #tpu.memory_space<vmem>>, vector<1x1x4x8xf32>
    %113 = vector.shape_cast %112 : vector<1x1x4x8xf32> to vector<4x8xf32>
    %c0_95 = arith.constant 0 : index
    %114 = arith.index_cast %110 : i32 to index
    %c0_96 = arith.constant 0 : index
    %c0_97 = arith.constant 0 : index
    %115 = vector.load %arg4[%c0_95, %114, %c0_96, %c0_97] : memref<1x18x4x9xf32, #tpu.memory_space<vmem>>, vector<1x1x4x8xf32>
    %116 = vector.shape_cast %115 : vector<1x1x4x8xf32> to vector<4x8xf32>
    %c0_98 = arith.constant 0 : index
    %117 = arith.index_cast %110 : i32 to index
    %c0_99 = arith.constant 0 : index
    %c1_100 = arith.constant 1 : index
    %118 = vector.load %arg3[%c0_98, %117, %c0_99, %c1_100] : memref<1x18x4x9xf32, #tpu.memory_space<vmem>>, vector<1x1x4x8xf32>
    %119 = vector.shape_cast %118 : vector<1x1x4x8xf32> to vector<4x8xf32>
    %c2_i32_101 = arith.constant 2 : i32
    %120 = arith.muli %c2_i32_101, %108 : i32
    %c1_i32_102 = arith.constant 1 : i32
    %121 = arith.addi %120, %c1_i32_102 : i32
    %c0_103 = arith.constant 0 : index
    %122 = arith.index_cast %121 : i32 to index
    %c0_104 = arith.constant 0 : index
    %c0_105 = arith.constant 0 : index
    %123 = vector.load %arg3[%c0_103, %122, %c0_104, %c0_105] : memref<1x18x4x9xf32, #tpu.memory_space<vmem>>, vector<1x1x4x8xf32>
    %124 = vector.shape_cast %123 : vector<1x1x4x8xf32> to vector<4x8xf32>
    %c0_106 = arith.constant 0 : index
    %125 = arith.index_cast %121 : i32 to index
    %c0_107 = arith.constant 0 : index
    %c0_108 = arith.constant 0 : index
    %126 = vector.load %arg4[%c0_106, %125, %c0_107, %c0_108] : memref<1x18x4x9xf32, #tpu.memory_space<vmem>>, vector<1x1x4x8xf32>
    %127 = vector.shape_cast %126 : vector<1x1x4x8xf32> to vector<4x8xf32>
    %c0_109 = arith.constant 0 : index
    %128 = arith.index_cast %121 : i32 to index
    %c0_110 = arith.constant 0 : index
    %c1_111 = arith.constant 1 : index
    %129 = vector.load %arg3[%c0_109, %128, %c0_110, %c1_111] : memref<1x18x4x9xf32, #tpu.memory_space<vmem>>, vector<1x1x4x8xf32>
    %130 = vector.shape_cast %129 : vector<1x1x4x8xf32> to vector<4x8xf32>
    %c2_i32_112 = arith.constant 2 : i32
    %131 = arith.muli %c2_i32_112, %108 : i32
    %c2_i32_113 = arith.constant 2 : i32
    %132 = arith.addi %131, %c2_i32_113 : i32
    %c0_114 = arith.constant 0 : index
    %133 = arith.index_cast %132 : i32 to index
    %c0_115 = arith.constant 0 : index
    %c0_116 = arith.constant 0 : index
    %134 = vector.load %arg3[%c0_114, %133, %c0_115, %c0_116] : memref<1x18x4x9xf32, #tpu.memory_space<vmem>>, vector<1x1x4x8xf32>
    %135 = vector.shape_cast %134 : vector<1x1x4x8xf32> to vector<4x8xf32>
    %c0_117 = arith.constant 0 : index
    %136 = arith.index_cast %132 : i32 to index
    %c0_118 = arith.constant 0 : index
    %c0_119 = arith.constant 0 : index
    %137 = vector.load %arg4[%c0_117, %136, %c0_118, %c0_119] : memref<1x18x4x9xf32, #tpu.memory_space<vmem>>, vector<1x1x4x8xf32>
    %138 = vector.shape_cast %137 : vector<1x1x4x8xf32> to vector<4x8xf32>
    %c0_120 = arith.constant 0 : index
    %139 = arith.index_cast %132 : i32 to index
    %c0_121 = arith.constant 0 : index
    %c1_122 = arith.constant 1 : index
    %140 = vector.load %arg3[%c0_120, %139, %c0_121, %c1_122] : memref<1x18x4x9xf32, #tpu.memory_space<vmem>>, vector<1x1x4x8xf32>
    %141 = vector.shape_cast %140 : vector<1x1x4x8xf32> to vector<4x8xf32>
    %142 = tpu.concatenate %113, %116, %119, %124, %127, %130, %135, %138, %141 in 0 : vector<4x8xf32>, vector<4x8xf32>, vector<4x8xf32>, vector<4x8xf32>, vector<4x8xf32>, vector<4x8xf32>, vector<4x8xf32>, vector<4x8xf32>, vector<4x8xf32> -> vector<36x8xf32>
    %cst_123 = arith.constant dense<0.000000e+00> : vector<8x8xf32>
    %143 = tpu.matmul %0, %142, %cst_123 {dimension_numbers = #tpu.dot_dimension_numbers<[1], [0], [0], [1], [0, 0, 1, 1], [], []>} : vector<8x36xf32>, vector<36x8xf32>, vector<8x8xf32> -> vector<8x8xf32>
    %c0_124 = arith.constant 0 : index
    %c2 = arith.constant 2 : index
    %c0_125 = arith.constant 0 : index
    %c0_126 = arith.constant 0 : index
    %144 = vector.load %arg5[%c0_124, %c2, %c0_125, %c0_126] : memref<1x8x8x8xf32, #tpu.memory_space<vmem>>, vector<1x1x8x8xf32>
    %145 = vector.shape_cast %144 : vector<1x1x8x8xf32> to vector<8x8xf32>
    %146 = vector.shape_cast %143 : vector<8x8xf32> to vector<1x1x8x8xf32>
    tpu.vector_store %arg5[%c0_124, %c2, %c0_125, %c0_126], %146 {strides = array<i32>} : memref<1x8x8x8xf32, #tpu.memory_space<vmem>>, vector<1x1x8x8xf32>,
    %c8_i32_127 = arith.constant 8 : i32
    %147 = arith.cmpi slt, %107, %c8_i32_127 : i32
    %cst_128 = arith.constant 1.000000e+00 : f32
    %cst_129 = arith.constant 0.000000e+00 : f32
    %148 = arith.select %147, %cst_128, %cst_129 : f32
    %cst_130 = arith.constant dense<0.000000e+00> : vector<8xf32>
    %149 = vector.multi_reduction <add>, %143, %cst_130 [1] : vector<8x8xf32> to vector<8xf32>
    %150 = vector.shape_cast %149 : vector<8xf32> to vector<8x1xf32>
    %151 = arith.mulf %143, %143 : vector<8x8xf32>
    %cst_131 = arith.constant dense<0.000000e+00> : vector<8xf32>
    %152 = vector.multi_reduction <add>, %151, %cst_131 [1] : vector<8x8xf32> to vector<8xf32>
    %153 = vector.shape_cast %152 : vector<8xf32> to vector<8x1xf32>
    %154 = tpu.concatenate %150, %153 in 1 : vector<8x1xf32>, vector<8x1xf32> -> vector<8x2xf32>
    %155 = vector.broadcast %148 : f32 to vector<8x2xf32>
    %156 = arith.mulf %155, %154 : vector<8x2xf32>
    %157 = arith.addf %105, %156 : vector<8x2xf32>
    %c8_i32_132 = arith.constant 8 : i32
    %158 = arith.muli %arg1, %c8_i32_132 : i32
    %c3_i32 = arith.constant 3 : i32
    %159 = arith.addi %158, %c3_i32 : i32
    %c7_i32_133 = arith.constant 7 : i32
    %160 = arith.minsi %159, %c7_i32_133 : i32
    %c2_i32_134 = arith.constant 2 : i32
    %161 = arith.muli %c2_i32_134, %160 : i32
    %c0_i32_135 = arith.constant 0 : i32
    %162 = arith.addi %161, %c0_i32_135 : i32
    %c0_136 = arith.constant 0 : index
    %163 = arith.index_cast %162 : i32 to index
    %c0_137 = arith.constant 0 : index
    %c0_138 = arith.constant 0 : index
    %164 = vector.load %arg3[%c0_136, %163, %c0_137, %c0_138] : memref<1x18x4x9xf32, #tpu.memory_space<vmem>>, vector<1x1x4x8xf32>
    %165 = vector.shape_cast %164 : vector<1x1x4x8xf32> to vector<4x8xf32>
    %c0_139 = arith.constant 0 : index
    %166 = arith.index_cast %162 : i32 to index
    %c0_140 = arith.constant 0 : index
    %c0_141 = arith.constant 0 : index
    %167 = vector.load %arg4[%c0_139, %166, %c0_140, %c0_141] : memref<1x18x4x9xf32, #tpu.memory_space<vmem>>, vector<1x1x4x8xf32>
    %168 = vector.shape_cast %167 : vector<1x1x4x8xf32> to vector<4x8xf32>
    %c0_142 = arith.constant 0 : index
    %169 = arith.index_cast %162 : i32 to index
    %c0_143 = arith.constant 0 : index
    %c1_144 = arith.constant 1 : index
    %170 = vector.load %arg3[%c0_142, %169, %c0_143, %c1_144] : memref<1x18x4x9xf32, #tpu.memory_space<vmem>>, vector<1x1x4x8xf32>
    %171 = vector.shape_cast %170 : vector<1x1x4x8xf32> to vector<4x8xf32>
    %c2_i32_145 = arith.constant 2 : i32
    %172 = arith.muli %c2_i32_145, %160 : i32
    %c1_i32_146 = arith.constant 1 : i32
    %173 = arith.addi %172, %c1_i32_146 : i32
    %c0_147 = arith.constant 0 : index
    %174 = arith.index_cast %173 : i32 to index
    %c0_148 = arith.constant 0 : index
    %c0_149 = arith.constant 0 : index
    %175 = vector.load %arg3[%c0_147, %174, %c0_148, %c0_149] : memref<1x18x4x9xf32, #tpu.memory_space<vmem>>, vector<1x1x4x8xf32>
    %176 = vector.shape_cast %175 : vector<1x1x4x8xf32> to vector<4x8xf32>
    %c0_150 = arith.constant 0 : index
    %177 = arith.index_cast %173 : i32 to index
    %c0_151 = arith.constant 0 : index
    %c0_152 = arith.constant 0 : index
    %178 = vector.load %arg4[%c0_150, %177, %c0_151, %c0_152] : memref<1x18x4x9xf32, #tpu.memory_space<vmem>>, vector<1x1x4x8xf32>
    %179 = vector.shape_cast %178 : vector<1x1x4x8xf32> to vector<4x8xf32>
    %c0_153 = arith.constant 0 : index
    %180 = arith.index_cast %173 : i32 to index
    %c0_154 = arith.constant 0 : index
    %c1_155 = arith.constant 1 : index
    %181 = vector.load %arg3[%c0_153, %180, %c0_154, %c1_155] : memref<1x18x4x9xf32, #tpu.memory_space<vmem>>, vector<1x1x4x8xf32>
    %182 = vector.shape_cast %181 : vector<1x1x4x8xf32> to vector<4x8xf32>
    %c2_i32_156 = arith.constant 2 : i32
    %183 = arith.muli %c2_i32_156, %160 : i32
    %c2_i32_157 = arith.constant 2 : i32
    %184 = arith.addi %183, %c2_i32_157 : i32
    %c0_158 = arith.constant 0 : index
    %185 = arith.index_cast %184 : i32 to index
    %c0_159 = arith.constant 0 : index
    %c0_160 = arith.constant 0 : index
    %186 = vector.load %arg3[%c0_158, %185, %c0_159, %c0_160] : memref<1x18x4x9xf32, #tpu.memory_space<vmem>>, vector<1x1x4x8xf32>
    %187 = vector.shape_cast %186 : vector<1x1x4x8xf32> to vector<4x8xf32>
    %c0_161 = arith.constant 0 : index
    %188 = arith.index_cast %184 : i32 to index
    %c0_162 = arith.constant 0 : index
    %c0_163 = arith.constant 0 : index
    %189 = vector.load %arg4[%c0_161, %188, %c0_162, %c0_163] : memref<1x18x4x9xf32, #tpu.memory_space<vmem>>, vector<1x1x4x8xf32>
    %190 = vector.shape_cast %189 : vector<1x1x4x8xf32> to vector<4x8xf32>
    %c0_164 = arith.constant 0 : index
    %191 = arith.index_cast %184 : i32 to index
    %c0_165 = arith.constant 0 : index
    %c1_166 = arith.constant 1 : index
    %192 = vector.load %arg3[%c0_164, %191, %c0_165, %c1_166] : memref<1x18x4x9xf32, #tpu.memory_space<vmem>>, vector<1x1x4x8xf32>
    %193 = vector.shape_cast %192 : vector<1x1x4x8xf32> to vector<4x8xf32>
    %194 = tpu.concatenate %165, %168, %171, %176, %179, %182, %187, %190, %193 in 0 : vector<4x8xf32>, vector<4x8xf32>, vector<4x8xf32>, vector<4x8xf32>, vector<4x8xf32>, vector<4x8xf32>, vector<4x8xf32>, vector<4x8xf32>, vector<4x8xf32> -> vector<36x8xf32>
    %cst_167 = arith.constant dense<0.000000e+00> : vector<8x8xf32>
    %195 = tpu.matmul %0, %194, %cst_167 {dimension_numbers = #tpu.dot_dimension_numbers<[1], [0], [0], [1], [0, 0, 1, 1], [], []>} : vector<8x36xf32>, vector<36x8xf32>, vector<8x8xf32> -> vector<8x8xf32>
    %c0_168 = arith.constant 0 : index
    %c3 = arith.constant 3 : index
    %c0_169 = arith.constant 0 : index
    %c0_170 = arith.constant 0 : index
    %196 = vector.load %arg5[%c0_168, %c3, %c0_169, %c0_170] : memref<1x8x8x8xf32, #tpu.memory_space<vmem>>, vector<1x1x8x8xf32>
    %197 = vector.shape_cast %196 : vector<1x1x8x8xf32> to vector<8x8xf32>
    %198 = vector.shape_cast %195 : vector<8x8xf32> to vector<1x1x8x8xf32>
    tpu.vector_store %arg5[%c0_168, %c3, %c0_169, %c0_170], %198 {strides = array<i32>} : memref<1x8x8x8xf32, #tpu.memory_space<vmem>>, vector<1x1x8x8xf32>,
    %c8_i32_171 = arith.constant 8 : i32
    %199 = arith.cmpi slt, %159, %c8_i32_171 : i32
    %cst_172 = arith.constant 1.000000e+00 : f32
    %cst_173 = arith.constant 0.000000e+00 : f32
    %200 = arith.select %199, %cst_172, %cst_173 : f32
    %cst_174 = arith.constant dense<0.000000e+00> : vector<8xf32>
    %201 = vector.multi_reduction <add>, %195, %cst_174 [1] : vector<8x8xf32> to vector<8xf32>
    %202 = vector.shape_cast %201 : vector<8xf32> to vector<8x1xf32>
    %203 = arith.mulf %195, %195 : vector<8x8xf32>
    %cst_175 = arith.constant dense<0.000000e+00> : vector<8xf32>
    %204 = vector.multi_reduction <add>, %203, %cst_175 [1] : vector<8x8xf32> to vector<8xf32>
    %205 = vector.shape_cast %204 : vector<8xf32> to vector<8x1xf32>
    %206 = tpu.concatenate %202, %205 in 1 : vector<8x1xf32>, vector<8x1xf32> -> vector<8x2xf32>
    %207 = vector.broadcast %200 : f32 to vector<8x2xf32>
    %208 = arith.mulf %207, %206 : vector<8x2xf32>
    %209 = arith.addf %157, %208 : vector<8x2xf32>
    %c8_i32_176 = arith.constant 8 : i32
    %210 = arith.muli %arg1, %c8_i32_176 : i32
    %c4_i32 = arith.constant 4 : i32
    %211 = arith.addi %210, %c4_i32 : i32
    %c7_i32_177 = arith.constant 7 : i32
    %212 = arith.minsi %211, %c7_i32_177 : i32
    %c2_i32_178 = arith.constant 2 : i32
    %213 = arith.muli %c2_i32_178, %212 : i32
    %c0_i32_179 = arith.constant 0 : i32
    %214 = arith.addi %213, %c0_i32_179 : i32
    %c0_180 = arith.constant 0 : index
    %215 = arith.index_cast %214 : i32 to index
    %c0_181 = arith.constant 0 : index
    %c0_182 = arith.constant 0 : index
    %216 = vector.load %arg3[%c0_180, %215, %c0_181, %c0_182] : memref<1x18x4x9xf32, #tpu.memory_space<vmem>>, vector<1x1x4x8xf32>
    %217 = vector.shape_cast %216 : vector<1x1x4x8xf32> to vector<4x8xf32>
    %c0_183 = arith.constant 0 : index
    %218 = arith.index_cast %214 : i32 to index
    %c0_184 = arith.constant 0 : index
    %c0_185 = arith.constant 0 : index
    %219 = vector.load %arg4[%c0_183, %218, %c0_184, %c0_185] : memref<1x18x4x9xf32, #tpu.memory_space<vmem>>, vector<1x1x4x8xf32>
    %220 = vector.shape_cast %219 : vector<1x1x4x8xf32> to vector<4x8xf32>
    %c0_186 = arith.constant 0 : index
    %221 = arith.index_cast %214 : i32 to index
    %c0_187 = arith.constant 0 : index
    %c1_188 = arith.constant 1 : index
    %222 = vector.load %arg3[%c0_186, %221, %c0_187, %c1_188] : memref<1x18x4x9xf32, #tpu.memory_space<vmem>>, vector<1x1x4x8xf32>
    %223 = vector.shape_cast %222 : vector<1x1x4x8xf32> to vector<4x8xf32>
    %c2_i32_189 = arith.constant 2 : i32
    %224 = arith.muli %c2_i32_189, %212 : i32
    %c1_i32_190 = arith.constant 1 : i32
    %225 = arith.addi %224, %c1_i32_190 : i32
    %c0_191 = arith.constant 0 : index
    %226 = arith.index_cast %225 : i32 to index
    %c0_192 = arith.constant 0 : index
    %c0_193 = arith.constant 0 : index
    %227 = vector.load %arg3[%c0_191, %226, %c0_192, %c0_193] : memref<1x18x4x9xf32, #tpu.memory_space<vmem>>, vector<1x1x4x8xf32>
    %228 = vector.shape_cast %227 : vector<1x1x4x8xf32> to vector<4x8xf32>
    %c0_194 = arith.constant 0 : index
    %229 = arith.index_cast %225 : i32 to index
    %c0_195 = arith.constant 0 : index
    %c0_196 = arith.constant 0 : index
    %230 = vector.load %arg4[%c0_194, %229, %c0_195, %c0_196] : memref<1x18x4x9xf32, #tpu.memory_space<vmem>>, vector<1x1x4x8xf32>
    %231 = vector.shape_cast %230 : vector<1x1x4x8xf32> to vector<4x8xf32>
    %c0_197 = arith.constant 0 : index
    %232 = arith.index_cast %225 : i32 to index
    %c0_198 = arith.constant 0 : index
    %c1_199 = arith.constant 1 : index
    %233 = vector.load %arg3[%c0_197, %232, %c0_198, %c1_199] : memref<1x18x4x9xf32, #tpu.memory_space<vmem>>, vector<1x1x4x8xf32>
    %234 = vector.shape_cast %233 : vector<1x1x4x8xf32> to vector<4x8xf32>
    %c2_i32_200 = arith.constant 2 : i32
    %235 = arith.muli %c2_i32_200, %212 : i32
    %c2_i32_201 = arith.constant 2 : i32
    %236 = arith.addi %235, %c2_i32_201 : i32
    %c0_202 = arith.constant 0 : index
    %237 = arith.index_cast %236 : i32 to index
    %c0_203 = arith.constant 0 : index
    %c0_204 = arith.constant 0 : index
    %238 = vector.load %arg3[%c0_202, %237, %c0_203, %c0_204] : memref<1x18x4x9xf32, #tpu.memory_space<vmem>>, vector<1x1x4x8xf32>
    %239 = vector.shape_cast %238 : vector<1x1x4x8xf32> to vector<4x8xf32>
    %c0_205 = arith.constant 0 : index
    %240 = arith.index_cast %236 : i32 to index
    %c0_206 = arith.constant 0 : index
    %c0_207 = arith.constant 0 : index
    %241 = vector.load %arg4[%c0_205, %240, %c0_206, %c0_207] : memref<1x18x4x9xf32, #tpu.memory_space<vmem>>, vector<1x1x4x8xf32>
    %242 = vector.shape_cast %241 : vector<1x1x4x8xf32> to vector<4x8xf32>
    %c0_208 = arith.constant 0 : index
    %243 = arith.index_cast %236 : i32 to index
    %c0_209 = arith.constant 0 : index
    %c1_210 = arith.constant 1 : index
    %244 = vector.load %arg3[%c0_208, %243, %c0_209, %c1_210] : memref<1x18x4x9xf32, #tpu.memory_space<vmem>>, vector<1x1x4x8xf32>
    %245 = vector.shape_cast %244 : vector<1x1x4x8xf32> to vector<4x8xf32>
    %246 = tpu.concatenate %217, %220, %223, %228, %231, %234, %239, %242, %245 in 0 : vector<4x8xf32>, vector<4x8xf32>, vector<4x8xf32>, vector<4x8xf32>, vector<4x8xf32>, vector<4x8xf32>, vector<4x8xf32>, vector<4x8xf32>, vector<4x8xf32> -> vector<36x8xf32>
    %cst_211 = arith.constant dense<0.000000e+00> : vector<8x8xf32>
    %247 = tpu.matmul %0, %246, %cst_211 {dimension_numbers = #tpu.dot_dimension_numbers<[1], [0], [0], [1], [0, 0, 1, 1], [], []>} : vector<8x36xf32>, vector<36x8xf32>, vector<8x8xf32> -> vector<8x8xf32>
    %c0_212 = arith.constant 0 : index
    %c4 = arith.constant 4 : index
    %c0_213 = arith.constant 0 : index
    %c0_214 = arith.constant 0 : index
    %248 = vector.load %arg5[%c0_212, %c4, %c0_213, %c0_214] : memref<1x8x8x8xf32, #tpu.memory_space<vmem>>, vector<1x1x8x8xf32>
    %249 = vector.shape_cast %248 : vector<1x1x8x8xf32> to vector<8x8xf32>
    %250 = vector.shape_cast %247 : vector<8x8xf32> to vector<1x1x8x8xf32>
    tpu.vector_store %arg5[%c0_212, %c4, %c0_213, %c0_214], %250 {strides = array<i32>} : memref<1x8x8x8xf32, #tpu.memory_space<vmem>>, vector<1x1x8x8xf32>,
    %c8_i32_215 = arith.constant 8 : i32
    %251 = arith.cmpi slt, %211, %c8_i32_215 : i32
    %cst_216 = arith.constant 1.000000e+00 : f32
    %cst_217 = arith.constant 0.000000e+00 : f32
    %252 = arith.select %251, %cst_216, %cst_217 : f32
    %cst_218 = arith.constant dense<0.000000e+00> : vector<8xf32>
    %253 = vector.multi_reduction <add>, %247, %cst_218 [1] : vector<8x8xf32> to vector<8xf32>
    %254 = vector.shape_cast %253 : vector<8xf32> to vector<8x1xf32>
    %255 = arith.mulf %247, %247 : vector<8x8xf32>
    %cst_219 = arith.constant dense<0.000000e+00> : vector<8xf32>
    %256 = vector.multi_reduction <add>, %255, %cst_219 [1] : vector<8x8xf32> to vector<8xf32>
    %257 = vector.shape_cast %256 : vector<8xf32> to vector<8x1xf32>
    %258 = tpu.concatenate %254, %257 in 1 : vector<8x1xf32>, vector<8x1xf32> -> vector<8x2xf32>
    %259 = vector.broadcast %252 : f32 to vector<8x2xf32>
    %260 = arith.mulf %259, %258 : vector<8x2xf32>
    %261 = arith.addf %209, %260 : vector<8x2xf32>
    %c8_i32_220 = arith.constant 8 : i32
    %262 = arith.muli %arg1, %c8_i32_220 : i32
    %c5_i32 = arith.constant 5 : i32
    %263 = arith.addi %262, %c5_i32 : i32
    %c7_i32_221 = arith.constant 7 : i32
    %264 = arith.minsi %263, %c7_i32_221 : i32
    %c2_i32_222 = arith.constant 2 : i32
    %265 = arith.muli %c2_i32_222, %264 : i32
    %c0_i32_223 = arith.constant 0 : i32
    %266 = arith.addi %265, %c0_i32_223 : i32
    %c0_224 = arith.constant 0 : index
    %267 = arith.index_cast %266 : i32 to index
    %c0_225 = arith.constant 0 : index
    %c0_226 = arith.constant 0 : index
    %268 = vector.load %arg3[%c0_224, %267, %c0_225, %c0_226] : memref<1x18x4x9xf32, #tpu.memory_space<vmem>>, vector<1x1x4x8xf32>
    %269 = vector.shape_cast %268 : vector<1x1x4x8xf32> to vector<4x8xf32>
    %c0_227 = arith.constant 0 : index
    %270 = arith.index_cast %266 : i32 to index
    %c0_228 = arith.constant 0 : index
    %c0_229 = arith.constant 0 : index
    %271 = vector.load %arg4[%c0_227, %270, %c0_228, %c0_229] : memref<1x18x4x9xf32, #tpu.memory_space<vmem>>, vector<1x1x4x8xf32>
    %272 = vector.shape_cast %271 : vector<1x1x4x8xf32> to vector<4x8xf32>
    %c0_230 = arith.constant 0 : index
    %273 = arith.index_cast %266 : i32 to index
    %c0_231 = arith.constant 0 : index
    %c1_232 = arith.constant 1 : index
    %274 = vector.load %arg3[%c0_230, %273, %c0_231, %c1_232] : memref<1x18x4x9xf32, #tpu.memory_space<vmem>>, vector<1x1x4x8xf32>
    %275 = vector.shape_cast %274 : vector<1x1x4x8xf32> to vector<4x8xf32>
    %c2_i32_233 = arith.constant 2 : i32
    %276 = arith.muli %c2_i32_233, %264 : i32
    %c1_i32_234 = arith.constant 1 : i32
    %277 = arith.addi %276, %c1_i32_234 : i32
    %c0_235 = arith.constant 0 : index
    %278 = arith.index_cast %277 : i32 to index
    %c0_236 = arith.constant 0 : index
    %c0_237 = arith.constant 0 : index
    %279 = vector.load %arg3[%c0_235, %278, %c0_236, %c0_237] : memref<1x18x4x9xf32, #tpu.memory_space<vmem>>, vector<1x1x4x8xf32>
    %280 = vector.shape_cast %279 : vector<1x1x4x8xf32> to vector<4x8xf32>
    %c0_238 = arith.constant 0 : index
    %281 = arith.index_cast %277 : i32 to index
    %c0_239 = arith.constant 0 : index
    %c0_240 = arith.constant 0 : index
    %282 = vector.load %arg4[%c0_238, %281, %c0_239, %c0_240] : memref<1x18x4x9xf32, #tpu.memory_space<vmem>>, vector<1x1x4x8xf32>
    %283 = vector.shape_cast %282 : vector<1x1x4x8xf32> to vector<4x8xf32>
    %c0_241 = arith.constant 0 : index
    %284 = arith.index_cast %277 : i32 to index
    %c0_242 = arith.constant 0 : index
    %c1_243 = arith.constant 1 : index
    %285 = vector.load %arg3[%c0_241, %284, %c0_242, %c1_243] : memref<1x18x4x9xf32, #tpu.memory_space<vmem>>, vector<1x1x4x8xf32>
    %286 = vector.shape_cast %285 : vector<1x1x4x8xf32> to vector<4x8xf32>
    %c2_i32_244 = arith.constant 2 : i32
    %287 = arith.muli %c2_i32_244, %264 : i32
    %c2_i32_245 = arith.constant 2 : i32
    %288 = arith.addi %287, %c2_i32_245 : i32
    %c0_246 = arith.constant 0 : index
    %289 = arith.index_cast %288 : i32 to index
    %c0_247 = arith.constant 0 : index
    %c0_248 = arith.constant 0 : index
    %290 = vector.load %arg3[%c0_246, %289, %c0_247, %c0_248] : memref<1x18x4x9xf32, #tpu.memory_space<vmem>>, vector<1x1x4x8xf32>
    %291 = vector.shape_cast %290 : vector<1x1x4x8xf32> to vector<4x8xf32>
    %c0_249 = arith.constant 0 : index
    %292 = arith.index_cast %288 : i32 to index
    %c0_250 = arith.constant 0 : index
    %c0_251 = arith.constant 0 : index
    %293 = vector.load %arg4[%c0_249, %292, %c0_250, %c0_251] : memref<1x18x4x9xf32, #tpu.memory_space<vmem>>, vector<1x1x4x8xf32>
    %294 = vector.shape_cast %293 : vector<1x1x4x8xf32> to vector<4x8xf32>
    %c0_252 = arith.constant 0 : index
    %295 = arith.index_cast %288 : i32 to index
    %c0_253 = arith.constant 0 : index
    %c1_254 = arith.constant 1 : index
    %296 = vector.load %arg3[%c0_252, %295, %c0_253, %c1_254] : memref<1x18x4x9xf32, #tpu.memory_space<vmem>>, vector<1x1x4x8xf32>
    %297 = vector.shape_cast %296 : vector<1x1x4x8xf32> to vector<4x8xf32>
    %298 = tpu.concatenate %269, %272, %275, %280, %283, %286, %291, %294, %297 in 0 : vector<4x8xf32>, vector<4x8xf32>, vector<4x8xf32>, vector<4x8xf32>, vector<4x8xf32>, vector<4x8xf32>, vector<4x8xf32>, vector<4x8xf32>, vector<4x8xf32> -> vector<36x8xf32>
    %cst_255 = arith.constant dense<0.000000e+00> : vector<8x8xf32>
    %299 = tpu.matmul %0, %298, %cst_255 {dimension_numbers = #tpu.dot_dimension_numbers<[1], [0], [0], [1], [0, 0, 1, 1], [], []>} : vector<8x36xf32>, vector<36x8xf32>, vector<8x8xf32> -> vector<8x8xf32>
    %c0_256 = arith.constant 0 : index
    %c5 = arith.constant 5 : index
    %c0_257 = arith.constant 0 : index
    %c0_258 = arith.constant 0 : index
    %300 = vector.load %arg5[%c0_256, %c5, %c0_257, %c0_258] : memref<1x8x8x8xf32, #tpu.memory_space<vmem>>, vector<1x1x8x8xf32>
    %301 = vector.shape_cast %300 : vector<1x1x8x8xf32> to vector<8x8xf32>
    %302 = vector.shape_cast %299 : vector<8x8xf32> to vector<1x1x8x8xf32>
    tpu.vector_store %arg5[%c0_256, %c5, %c0_257, %c0_258], %302 {strides = array<i32>} : memref<1x8x8x8xf32, #tpu.memory_space<vmem>>, vector<1x1x8x8xf32>,
    %c8_i32_259 = arith.constant 8 : i32
    %303 = arith.cmpi slt, %263, %c8_i32_259 : i32
    %cst_260 = arith.constant 1.000000e+00 : f32
    %cst_261 = arith.constant 0.000000e+00 : f32
    %304 = arith.select %303, %cst_260, %cst_261 : f32
    %cst_262 = arith.constant dense<0.000000e+00> : vector<8xf32>
    %305 = vector.multi_reduction <add>, %299, %cst_262 [1] : vector<8x8xf32> to vector<8xf32>
    %306 = vector.shape_cast %305 : vector<8xf32> to vector<8x1xf32>
    %307 = arith.mulf %299, %299 : vector<8x8xf32>
    %cst_263 = arith.constant dense<0.000000e+00> : vector<8xf32>
    %308 = vector.multi_reduction <add>, %307, %cst_263 [1] : vector<8x8xf32> to vector<8xf32>
    %309 = vector.shape_cast %308 : vector<8xf32> to vector<8x1xf32>
    %310 = tpu.concatenate %306, %309 in 1 : vector<8x1xf32>, vector<8x1xf32> -> vector<8x2xf32>
    %311 = vector.broadcast %304 : f32 to vector<8x2xf32>
    %312 = arith.mulf %311, %310 : vector<8x2xf32>
    %313 = arith.addf %261, %312 : vector<8x2xf32>
    %c8_i32_264 = arith.constant 8 : i32
    %314 = arith.muli %arg1, %c8_i32_264 : i32
    %c6_i32 = arith.constant 6 : i32
    %315 = arith.addi %314, %c6_i32 : i32
    %c7_i32_265 = arith.constant 7 : i32
    %316 = arith.minsi %315, %c7_i32_265 : i32
    %c2_i32_266 = arith.constant 2 : i32
    %317 = arith.muli %c2_i32_266, %316 : i32
    %c0_i32_267 = arith.constant 0 : i32
    %318 = arith.addi %317, %c0_i32_267 : i32
    %c0_268 = arith.constant 0 : index
    %319 = arith.index_cast %318 : i32 to index
    %c0_269 = arith.constant 0 : index
    %c0_270 = arith.constant 0 : index
    %320 = vector.load %arg3[%c0_268, %319, %c0_269, %c0_270] : memref<1x18x4x9xf32, #tpu.memory_space<vmem>>, vector<1x1x4x8xf32>
    %321 = vector.shape_cast %320 : vector<1x1x4x8xf32> to vector<4x8xf32>
    %c0_271 = arith.constant 0 : index
    %322 = arith.index_cast %318 : i32 to index
    %c0_272 = arith.constant 0 : index
    %c0_273 = arith.constant 0 : index
    %323 = vector.load %arg4[%c0_271, %322, %c0_272, %c0_273] : memref<1x18x4x9xf32, #tpu.memory_space<vmem>>, vector<1x1x4x8xf32>
    %324 = vector.shape_cast %323 : vector<1x1x4x8xf32> to vector<4x8xf32>
    %c0_274 = arith.constant 0 : index
    %325 = arith.index_cast %318 : i32 to index
    %c0_275 = arith.constant 0 : index
    %c1_276 = arith.constant 1 : index
    %326 = vector.load %arg3[%c0_274, %325, %c0_275, %c1_276] : memref<1x18x4x9xf32, #tpu.memory_space<vmem>>, vector<1x1x4x8xf32>
    %327 = vector.shape_cast %326 : vector<1x1x4x8xf32> to vector<4x8xf32>
    %c2_i32_277 = arith.constant 2 : i32
    %328 = arith.muli %c2_i32_277, %316 : i32
    %c1_i32_278 = arith.constant 1 : i32
    %329 = arith.addi %328, %c1_i32_278 : i32
    %c0_279 = arith.constant 0 : index
    %330 = arith.index_cast %329 : i32 to index
    %c0_280 = arith.constant 0 : index
    %c0_281 = arith.constant 0 : index
    %331 = vector.load %arg3[%c0_279, %330, %c0_280, %c0_281] : memref<1x18x4x9xf32, #tpu.memory_space<vmem>>, vector<1x1x4x8xf32>
    %332 = vector.shape_cast %331 : vector<1x1x4x8xf32> to vector<4x8xf32>
    %c0_282 = arith.constant 0 : index
    %333 = arith.index_cast %329 : i32 to index
    %c0_283 = arith.constant 0 : index
    %c0_284 = arith.constant 0 : index
    %334 = vector.load %arg4[%c0_282, %333, %c0_283, %c0_284] : memref<1x18x4x9xf32, #tpu.memory_space<vmem>>, vector<1x1x4x8xf32>
    %335 = vector.shape_cast %334 : vector<1x1x4x8xf32> to vector<4x8xf32>
    %c0_285 = arith.constant 0 : index
    %336 = arith.index_cast %329 : i32 to index
    %c0_286 = arith.constant 0 : index
    %c1_287 = arith.constant 1 : index
    %337 = vector.load %arg3[%c0_285, %336, %c0_286, %c1_287] : memref<1x18x4x9xf32, #tpu.memory_space<vmem>>, vector<1x1x4x8xf32>
    %338 = vector.shape_cast %337 : vector<1x1x4x8xf32> to vector<4x8xf32>
    %c2_i32_288 = arith.constant 2 : i32
    %339 = arith.muli %c2_i32_288, %316 : i32
    %c2_i32_289 = arith.constant 2 : i32
    %340 = arith.addi %339, %c2_i32_289 : i32
    %c0_290 = arith.constant 0 : index
    %341 = arith.index_cast %340 : i32 to index
    %c0_291 = arith.constant 0 : index
    %c0_292 = arith.constant 0 : index
    %342 = vector.load %arg3[%c0_290, %341, %c0_291, %c0_292] : memref<1x18x4x9xf32, #tpu.memory_space<vmem>>, vector<1x1x4x8xf32>
    %343 = vector.shape_cast %342 : vector<1x1x4x8xf32> to vector<4x8xf32>
    %c0_293 = arith.constant 0 : index
    %344 = arith.index_cast %340 : i32 to index
    %c0_294 = arith.constant 0 : index
    %c0_295 = arith.constant 0 : index
    %345 = vector.load %arg4[%c0_293, %344, %c0_294, %c0_295] : memref<1x18x4x9xf32, #tpu.memory_space<vmem>>, vector<1x1x4x8xf32>
    %346 = vector.shape_cast %345 : vector<1x1x4x8xf32> to vector<4x8xf32>
    %c0_296 = arith.constant 0 : index
    %347 = arith.index_cast %340 : i32 to index
    %c0_297 = arith.constant 0 : index
    %c1_298 = arith.constant 1 : index
    %348 = vector.load %arg3[%c0_296, %347, %c0_297, %c1_298] : memref<1x18x4x9xf32, #tpu.memory_space<vmem>>, vector<1x1x4x8xf32>
    %349 = vector.shape_cast %348 : vector<1x1x4x8xf32> to vector<4x8xf32>
    %350 = tpu.concatenate %321, %324, %327, %332, %335, %338, %343, %346, %349 in 0 : vector<4x8xf32>, vector<4x8xf32>, vector<4x8xf32>, vector<4x8xf32>, vector<4x8xf32>, vector<4x8xf32>, vector<4x8xf32>, vector<4x8xf32>, vector<4x8xf32> -> vector<36x8xf32>
    %cst_299 = arith.constant dense<0.000000e+00> : vector<8x8xf32>
    %351 = tpu.matmul %0, %350, %cst_299 {dimension_numbers = #tpu.dot_dimension_numbers<[1], [0], [0], [1], [0, 0, 1, 1], [], []>} : vector<8x36xf32>, vector<36x8xf32>, vector<8x8xf32> -> vector<8x8xf32>
    %c0_300 = arith.constant 0 : index
    %c6 = arith.constant 6 : index
    %c0_301 = arith.constant 0 : index
    %c0_302 = arith.constant 0 : index
    %352 = vector.load %arg5[%c0_300, %c6, %c0_301, %c0_302] : memref<1x8x8x8xf32, #tpu.memory_space<vmem>>, vector<1x1x8x8xf32>
    %353 = vector.shape_cast %352 : vector<1x1x8x8xf32> to vector<8x8xf32>
    %354 = vector.shape_cast %351 : vector<8x8xf32> to vector<1x1x8x8xf32>
    tpu.vector_store %arg5[%c0_300, %c6, %c0_301, %c0_302], %354 {strides = array<i32>} : memref<1x8x8x8xf32, #tpu.memory_space<vmem>>, vector<1x1x8x8xf32>,
    %c8_i32_303 = arith.constant 8 : i32
    %355 = arith.cmpi slt, %315, %c8_i32_303 : i32
    %cst_304 = arith.constant 1.000000e+00 : f32
    %cst_305 = arith.constant 0.000000e+00 : f32
    %356 = arith.select %355, %cst_304, %cst_305 : f32
    %cst_306 = arith.constant dense<0.000000e+00> : vector<8xf32>
    %357 = vector.multi_reduction <add>, %351, %cst_306 [1] : vector<8x8xf32> to vector<8xf32>
    %358 = vector.shape_cast %357 : vector<8xf32> to vector<8x1xf32>
    %359 = arith.mulf %351, %351 : vector<8x8xf32>
    %cst_307 = arith.constant dense<0.000000e+00> : vector<8xf32>
    %360 = vector.multi_reduction <add>, %359, %cst_307 [1] : vector<8x8xf32> to vector<8xf32>
    %361 = vector.shape_cast %360 : vector<8xf32> to vector<8x1xf32>
    %362 = tpu.concatenate %358, %361 in 1 : vector<8x1xf32>, vector<8x1xf32> -> vector<8x2xf32>
    %363 = vector.broadcast %356 : f32 to vector<8x2xf32>
    %364 = arith.mulf %363, %362 : vector<8x2xf32>
    %365 = arith.addf %313, %364 : vector<8x2xf32>
    %c8_i32_308 = arith.constant 8 : i32
    %366 = arith.muli %arg1, %c8_i32_308 : i32
    %c7_i32_309 = arith.constant 7 : i32
    %367 = arith.addi %366, %c7_i32_309 : i32
    %c7_i32_310 = arith.constant 7 : i32
    %368 = arith.minsi %367, %c7_i32_310 : i32
    %c2_i32_311 = arith.constant 2 : i32
    %369 = arith.muli %c2_i32_311, %368 : i32
    %c0_i32_312 = arith.constant 0 : i32
    %370 = arith.addi %369, %c0_i32_312 : i32
    %c0_313 = arith.constant 0 : index
    %371 = arith.index_cast %370 : i32 to index
    %c0_314 = arith.constant 0 : index
    %c0_315 = arith.constant 0 : index
    %372 = vector.load %arg3[%c0_313, %371, %c0_314, %c0_315] : memref<1x18x4x9xf32, #tpu.memory_space<vmem>>, vector<1x1x4x8xf32>
    %373 = vector.shape_cast %372 : vector<1x1x4x8xf32> to vector<4x8xf32>
    %c0_316 = arith.constant 0 : index
    %374 = arith.index_cast %370 : i32 to index
    %c0_317 = arith.constant 0 : index
    %c0_318 = arith.constant 0 : index
    %375 = vector.load %arg4[%c0_316, %374, %c0_317, %c0_318] : memref<1x18x4x9xf32, #tpu.memory_space<vmem>>, vector<1x1x4x8xf32>
    %376 = vector.shape_cast %375 : vector<1x1x4x8xf32> to vector<4x8xf32>
    %c0_319 = arith.constant 0 : index
    %377 = arith.index_cast %370 : i32 to index
    %c0_320 = arith.constant 0 : index
    %c1_321 = arith.constant 1 : index
    %378 = vector.load %arg3[%c0_319, %377, %c0_320, %c1_321] : memref<1x18x4x9xf32, #tpu.memory_space<vmem>>, vector<1x1x4x8xf32>
    %379 = vector.shape_cast %378 : vector<1x1x4x8xf32> to vector<4x8xf32>
    %c2_i32_322 = arith.constant 2 : i32
    %380 = arith.muli %c2_i32_322, %368 : i32
    %c1_i32_323 = arith.constant 1 : i32
    %381 = arith.addi %380, %c1_i32_323 : i32
    %c0_324 = arith.constant 0 : index
    %382 = arith.index_cast %381 : i32 to index
    %c0_325 = arith.constant 0 : index
    %c0_326 = arith.constant 0 : index
    %383 = vector.load %arg3[%c0_324, %382, %c0_325, %c0_326] : memref<1x18x4x9xf32, #tpu.memory_space<vmem>>, vector<1x1x4x8xf32>
    %384 = vector.shape_cast %383 : vector<1x1x4x8xf32> to vector<4x8xf32>
    %c0_327 = arith.constant 0 : index
    %385 = arith.index_cast %381 : i32 to index
    %c0_328 = arith.constant 0 : index
    %c0_329 = arith.constant 0 : index
    %386 = vector.load %arg4[%c0_327, %385, %c0_328, %c0_329] : memref<1x18x4x9xf32, #tpu.memory_space<vmem>>, vector<1x1x4x8xf32>
    %387 = vector.shape_cast %386 : vector<1x1x4x8xf32> to vector<4x8xf32>
    %c0_330 = arith.constant 0 : index
    %388 = arith.index_cast %381 : i32 to index
    %c0_331 = arith.constant 0 : index
    %c1_332 = arith.constant 1 : index
    %389 = vector.load %arg3[%c0_330, %388, %c0_331, %c1_332] : memref<1x18x4x9xf32, #tpu.memory_space<vmem>>, vector<1x1x4x8xf32>
    %390 = vector.shape_cast %389 : vector<1x1x4x8xf32> to vector<4x8xf32>
    %c2_i32_333 = arith.constant 2 : i32
    %391 = arith.muli %c2_i32_333, %368 : i32
    %c2_i32_334 = arith.constant 2 : i32
    %392 = arith.addi %391, %c2_i32_334 : i32
    %c0_335 = arith.constant 0 : index
    %393 = arith.index_cast %392 : i32 to index
    %c0_336 = arith.constant 0 : index
    %c0_337 = arith.constant 0 : index
    %394 = vector.load %arg3[%c0_335, %393, %c0_336, %c0_337] : memref<1x18x4x9xf32, #tpu.memory_space<vmem>>, vector<1x1x4x8xf32>
    %395 = vector.shape_cast %394 : vector<1x1x4x8xf32> to vector<4x8xf32>
    %c0_338 = arith.constant 0 : index
    %396 = arith.index_cast %392 : i32 to index
    %c0_339 = arith.constant 0 : index
    %c0_340 = arith.constant 0 : index
    %397 = vector.load %arg4[%c0_338, %396, %c0_339, %c0_340] : memref<1x18x4x9xf32, #tpu.memory_space<vmem>>, vector<1x1x4x8xf32>
    %398 = vector.shape_cast %397 : vector<1x1x4x8xf32> to vector<4x8xf32>
    %c0_341 = arith.constant 0 : index
    %399 = arith.index_cast %392 : i32 to index
    %c0_342 = arith.constant 0 : index
    %c1_343 = arith.constant 1 : index
    %400 = vector.load %arg3[%c0_341, %399, %c0_342, %c1_343] : memref<1x18x4x9xf32, #tpu.memory_space<vmem>>, vector<1x1x4x8xf32>
    %401 = vector.shape_cast %400 : vector<1x1x4x8xf32> to vector<4x8xf32>
    %402 = tpu.concatenate %373, %376, %379, %384, %387, %390, %395, %398, %401 in 0 : vector<4x8xf32>, vector<4x8xf32>, vector<4x8xf32>, vector<4x8xf32>, vector<4x8xf32>, vector<4x8xf32>, vector<4x8xf32>, vector<4x8xf32>, vector<4x8xf32> -> vector<36x8xf32>
    %cst_344 = arith.constant dense<0.000000e+00> : vector<8x8xf32>
    %403 = tpu.matmul %0, %402, %cst_344 {dimension_numbers = #tpu.dot_dimension_numbers<[1], [0], [0], [1], [0, 0, 1, 1], [], []>} : vector<8x36xf32>, vector<36x8xf32>, vector<8x8xf32> -> vector<8x8xf32>
    %c0_345 = arith.constant 0 : index
    %c7 = arith.constant 7 : index
    %c0_346 = arith.constant 0 : index
    %c0_347 = arith.constant 0 : index
    %404 = vector.load %arg5[%c0_345, %c7, %c0_346, %c0_347] : memref<1x8x8x8xf32, #tpu.memory_space<vmem>>, vector<1x1x8x8xf32>
    %405 = vector.shape_cast %404 : vector<1x1x8x8xf32> to vector<8x8xf32>
    %406 = vector.shape_cast %403 : vector<8x8xf32> to vector<1x1x8x8xf32>
    tpu.vector_store %arg5[%c0_345, %c7, %c0_346, %c0_347], %406 {strides = array<i32>} : memref<1x8x8x8xf32, #tpu.memory_space<vmem>>, vector<1x1x8x8xf32>,
    %c8_i32_348 = arith.constant 8 : i32
    %407 = arith.cmpi slt, %367, %c8_i32_348 : i32
    %cst_349 = arith.constant 1.000000e+00 : f32
    %cst_350 = arith.constant 0.000000e+00 : f32
    %408 = arith.select %407, %cst_349, %cst_350 : f32
    %cst_351 = arith.constant dense<0.000000e+00> : vector<8xf32>
    %409 = vector.multi_reduction <add>, %403, %cst_351 [1] : vector<8x8xf32> to vector<8xf32>
    %410 = vector.shape_cast %409 : vector<8xf32> to vector<8x1xf32>
    %411 = arith.mulf %403, %403 : vector<8x8xf32>
    %cst_352 = arith.constant dense<0.000000e+00> : vector<8xf32>
    %412 = vector.multi_reduction <add>, %411, %cst_352 [1] : vector<8x8xf32> to vector<8xf32>
    %413 = vector.shape_cast %412 : vector<8xf32> to vector<8x1xf32>
    %414 = tpu.concatenate %410, %413 in 1 : vector<8x1xf32>, vector<8x1xf32> -> vector<8x2xf32>
    %415 = vector.broadcast %408 : f32 to vector<8x2xf32>
    %416 = arith.mulf %415, %414 : vector<8x2xf32>
    %417 = arith.addf %365, %416 : vector<8x2xf32>
    %418 = vector.shape_cast %417 : vector<8x2xf32> to vector<1x1x8x2xf32>
    %c0_353 = arith.constant 0 : index
    %c0_354 = arith.constant 0 : index
    %c0_355 = arith.constant 0 : index
    %c0_356 = arith.constant 0 : index
    %419 = vector.load %arg6[%c0_353, %c0_354, %c0_355, %c0_356] : memref<1x1x8x2xf32, #tpu.memory_space<vmem>>, vector<1x1x8x2xf32>
    tpu.vector_store %arg6[%c0_353, %c0_354, %c0_355, %c0_356], %418 {strides = array<i32>} : memref<1x1x8x2xf32, #tpu.memory_space<vmem>>, vector<1x1x8x2xf32>,
    return
  }
  func.func @transform_0(%arg0: i32, %arg1: i32) -> (i32, i32) {
    %c0_i32 = arith.constant 0 : i32
    %c0_i32_0 = arith.constant 0 : i32
    %c0_i32_1 = arith.constant 0 : i32
    return %c0_i32, %c0_i32_0 : i32, i32
  }
  func.func @transform_1(%arg0: i32, %arg1: i32) -> (i32, i32, i32, i32) {
    %c0_i32 = arith.constant 0 : i32
    %c0_i32_0 = arith.constant 0 : i32
    %c0_i32_1 = arith.constant 0 : i32
    %c0_i32_2 = arith.constant 0 : i32
    return %arg0, %c0_i32, %c0_i32_0, %c0_i32_1 : i32, i32, i32, i32
  }
  func.func @transform_2(%arg0: i32, %arg1: i32) -> (i32, i32, i32, i32) {
    %c0_i32 = arith.constant 0 : i32
    %c0_i32_0 = arith.constant 0 : i32
    %c0_i32_1 = arith.constant 0 : i32
    %c0_i32_2 = arith.constant 0 : i32
    return %arg0, %c0_i32, %c0_i32_0, %c0_i32_1 : i32, i32, i32, i32
  }
  func.func @transform_3(%arg0: i32, %arg1: i32) -> (i32, i32, i32, i32) {
    %c0_i32 = arith.constant 0 : i32
    %c0_i32_0 = arith.constant 0 : i32
    %c0_i32_1 = arith.constant 0 : i32
    return %arg0, %arg1, %c0_i32, %c0_i32_0 : i32, i32, i32, i32
  }
  func.func @transform_4(%arg0: i32, %arg1: i32) -> (i32, i32, i32, i32) {
    %c0_i32 = arith.constant 0 : i32
    %c0_i32_0 = arith.constant 0 : i32
    %c0_i32_1 = arith.constant 0 : i32
    return %arg0, %arg1, %c0_i32, %c0_i32_0 : i32, i32, i32, i32
  }
}

</mosaic_0001>

<bundles_post_ra>
// kernel: tpu_custom_call.1
= control target key start
LH: loop header
LB: loop body
LE: loop exit
PB: predicated region body
PF: predicated region fallthrough
CT: control target
= control target key end

     0   :  { %10 = vsyncpa [#allocation3], 0  ;;  %s1943_s0 = inlined_call_operand.vmem [shape: f32[8,36], index: 0, kind: input, shape index: {}]   ;;  %s1944_s1 = inlined_call_operand.vmem [shape: f32[2,18,4,9], index: 1, kind: input, shape index: {}]   ;;  %s1945_s2 = inlined_call_operand.vmem [shape: f32[2,18,4,9], index: 2, kind: input, shape index: {}]   ;;  %s1946_s3 = inlined_call_operand.hbm [shape: f32[2,8,8,8], index: 3, kind: output, shape index: {0}]   ;;  %s1947_s4 = inlined_call_operand.vmem [shape: f32[2,1,8,2], index: 4, kind: output, shape index: {1}]  }
   0x1   :  { %12 = vsyncpa [#allocation3 + $0x1], 0  ;;  %s1530_s15 = smov 0   ;;  %s1532_s16 = smov 0  }
   0x2   :  { %s1534_s17 = smov 0   ;;  %s1536_s18 = smov 0  }
   0x3   :  { %s1538_s19 = smov 0   ;;  %s1540_s20 = smov 0  }
   0x4 LB: > { %s1211_s21 = sadd.s32 4294967295, %s1500_s20   ;;  %s1212_s22 = sadd.s32 4294967294, %s1500_s20   ;;  %s1500_s20 = sphi %s1540_s20, %s18_s20   ;;  %s1496_s19 = sphi %s1538_s19, %s1954_s19   ;;  %s1492_s18 = sphi %s1536_s18, %s1953_s18   ;;  %s1488_s17 = sphi %s1534_s17, %s1952_s17   ;;  %s1484_s16 = sphi %s1532_s16, %s1951_s16   ;;  %s1480_s15 = sphi %s1530_s15, %s1950_s15  }
   0x5   : > { %s30_s23 = sadd.s32 1, %s1496_s19  ;;  %s112_s24 = sadd.s32 1, %s1488_s17 }
   0x6   : > { %p32_p0 = scmp.ge.s32.totalorder %s30_s23, 2  ;;  %p122_p1 = scmp.ne.s32.totalorder %s1488_s17, %s1484_s16 }
   0x7   : > { %p123_p2 = scmp.eq.s32.totalorder %s1211_s21, 1  ;;  %p128_p3 = scmp.ne.s32.totalorder %s1484_s16, %s1480_s15 }
   0x8   : > { %s1956_s23 = smov (%p32_p0, %s30_s23), 0  ;;  %p129_p5 = scmp.eq.s32.totalorder %s1212_s22, 1 }
   0x9   : > { %p1570_p4 = por %p123_p2, %p122_p1  ;;  %s107_s26 = ssub.s32 %s1496_s19, %s1956_s23 }
   0xa   : > { %p1215_p6 = scmp.ge.s32.totalorder %s1500_s20, 1  ;;  %p110_p7 = scmp.eq.s32.totalorder %s107_s26, 0 }
   0xb   : > { %p1577_p8 = por %p129_p5, %p128_p3  ;;  %p194_p9 = scmp.lt.s32.totalorder %s1500_s20, 3 }
   0xc   : > { %s1583_s28 = scalar_select %p110_p7, %s1488_s17, %s112_s24  }
   0xd   : > { %p195_p10 = pnand %p1215_p6, %p194_p9 }
   0xe   : > { %p232_p11 = scmp.lt.s32.totalorder (!%p195_p10), %s1492_s18, 1  ;;  %s1502_s8 = smov (!%p195_p10), 127  }
   0xf   : > { %198 = sbr.rel (%p195_p10) target bundleno = 452 (0x1c4), region = 32  ;;  %s220_s14 = sand.u32 (!%p195_p10), 1, %s1484_s16  }
  0x10   : > { %s1216_s21 = sshll.u32 (!%p195_p10), %s220_s14, 6  ;;  %s1322_s24 = sshll.u32 (!%p195_p10), %s1492_s18, 6 }
  0x11   : > { %s1858_s22 = scalar_lea.vmem (!%p195_p10), [#allocation2], %s1216_s21  ;;  %s928_s5 = scalar_lea.hbm (!%p195_p10), %s1946_s3, %s1322_s24 }
  0x12   : > { %s929_s6 = sshll.u32 (!%p195_p10), %s1858_s22, 4  ;;  %s1442_s12 = scalar_lea.hbm (!%p195_p10), %s1946_s3, 128  ;;  %s930_s6 = int_to_ptr.vmem [resolvable:$true] %s929_s6 }
  0x14   : > { %s1587_s29 = scalar_select %p232_p11, %s1492_s18, 1  ;;  %vm291_vm0 = vcmask 1043456   ;;  %vm296_vm1 = vcmask 293888   ;;  %vm322_vm2 = vcmask 64512  }
  0x16   : > { %s1323_s30 = smul.u32 72, %s1587_s29 }
  0x18   : > { %s1595_s7 = scalar_lea.vmem %s1944_s1, %s1323_s30  ;;  %s1727_s11 = scalar_lea.vmem %s1945_s2, %s1323_s30 }
  0x19   : > { %v1598_v0 = vld [vmem:[%s1595_s7 + $0x18] sm:$0xf]  ;;  %v1601_v1 = vld [vmem:[%s1595_s7 + $0x20] sm:$0xf]  ;;  %v1608_v2 = vld [vmem:[%s1595_s7 + $0x4] sm:$0xf] }
  0x1a   : > { %457 = vrot.lane.b32.xlu0 %v1598_v0, %s1502_s8  ;;  %538 = vrot.lane.b32.xlu1 %v1601_v1, %s1502_s8  ;;  %v1611_v3 = vld [vmem:[%s1595_s7 + $0x14] sm:$0xf]  ;;  %v280_v4 = vrot.slane %v1608_v2, 4  ;;  %v1233_v6 = vld [vmem:[%s1595_s7 + $0x10] sm:$0xf] }
  0x1b   : > { %v448_v5 = vrot.slane %v1611_v3, 4  ;;  %v1617_v7 = vld [vmem:[%s1595_s7 + $0x8] sm:$0xf]  ;;  %376 = vrot.lane.b32.xlu2 %v1233_v6, %s1502_s8  ;;  %v1625_v9 = vld [vmem:[%s1595_s7 + $0x1c] sm:$0xf] }
  0x1c   : > { %v1628_v10 = vld [vmem:[%s1595_s7 + $0xc] sm:$0xf]  ;;  %v1631_v11 = vld [vmem:[%s1595_s7 + $0x10] sm:$0xf]  ;;  %v529_v12 = vrot.slane %v1625_v9, 4 }
  0x1d   : > { %v1382_v8 = vpack.i.bf16 %v280_v4, %v448_v5  ;;  %v367_v13 = vrot.slane %v1628_v10, 4  ;;  %v1642_v15 = vld [vmem:[%s1595_s7] sm:$0xf]  ;;  %v1645_v16 = vld [vmem:[%s1595_s7 + $0x8] sm:$0xf] }
  0x1e   : > { %v1387_v14 = vpack.i.bf16 %v529_v12, %v1631_v11  ;;  %v1648_v17 = vld [vmem:[%s1595_s7 + $0x18] sm:$0xf]  ;;  %v1662_v21 = vld [vmem:[%s1595_s7 + $0x24] sm:$0xf]  ;;  %v1665_v22 = vld [vmem:[%s1595_s7 + $0x34] sm:$0xf] }
  0x1f   : > { %v1392_v18 = vpack.i.bf16 %v367_v13, %v1642_v15  ;;  %v1397_v19 = vpack.i.bf16 %v1645_v16, %v1648_v17  ;;  %v1659_v20 = vld [vmem:[%s1595_s7 + $0x38] sm:$0xf]  ;;  %v610_v23 = vrot.slane %v1662_v21, 4  ;;  %v772_v24 = vrot.slane %v1665_v22, 4  ;;  %v1672_v25 = vld [vmem:[%s1595_s7 + $0x28] sm:$0xf] }
  0x20   : > { %v1675_v26 = vld [vmem:[%s1595_s7 + $0x40] sm:$0xf]  ;;  %v1678_v27 = vld [vmem:[%s1595_s7 + $0x3c] sm:$0xf]  ;;  %v1690_v30 = vld [vmem:[%s1595_s7 + $0x30] sm:$0xf] }
  0x21   : > { %v853_v28 = vrot.slane %v1678_v27, 4  ;;  %v1402_v29 = vpack.i.bf16 %v610_v23, %v772_v24  ;;  %v1693_v31 = vld [vmem:[%s1595_s7 + $0x2c] sm:$0xf]  ;;  %v1701_v34 = vld [vmem:[%s1595_s7 + $0x30] sm:$0xf] }
  0x22   : > { %289 = vrot.lane.b32.xlu0 %v1617_v7, %s1502_s8  ;;  %1383 = vrot.lane.b32.xlu1 %v1382_v8, %s1502_s8  ;;  %v691_v33 = vrot.slane %v1693_v31, 4  ;;  %v1704_v35 = vld [vmem:[%s1595_s7 + $0x20] sm:$0xf]  ;;  %v1713_v37 = vld [vmem:[%s1595_s7 + $0x28] sm:$0xf] }
  0x23   : > { %1388 = vrot.lane.b32.xlu2 %v1387_v14, %s1502_s8  ;;  %v1407_v32 = vpack.i.bf16 %v853_v28, %v1690_v30  ;;  %v1716_v38 = vld [vmem:[%s1595_s7 + $0x38] sm:$0xf]  ;;  %v1235_v41 = vld [vmem:[%s1727_s11 + $0x10] sm:$0xf]  ;;  %v1261_v46 = vld [vmem:[%s1727_s11 + $0x20] sm:$0xf] }
  0x24   : > { %v1412_v36 = vpack.i.bf16 %v691_v33, %v1704_v35  ;;  %v1417_v39 = vpack.i.bf16 %v1713_v37, %v1716_v38  ;;  %v373_v42 = vrot.slane %v1235_v41, 4  ;;  %v1248_v45 = vld [vmem:[%s1727_s11 + $0x18] sm:$0xf]  ;;  %v535_v48 = vrot.slane %v1261_v46, 4  ;;  %v1257_v50 = vld [vmem:[%s1727_s11 + $0x1c] sm:$0xf] }
  0x25   : > { %v454_v47 = vrot.slane %v1248_v45, 4  ;;  %v1223_v55 = vld [vmem:[%s1727_s11 + $0x8] sm:$0xf]  ;;  %v1240_v59 = vld [vmem:[%s1727_s11 + $0x10] sm:$0xf]  ;;  %s931_s7 = sshll.u32 %s928_s5, 4  ;;  %s932_s7 = int_to_ptr.hbm [resolvable:$true] %s931_s7 }
  0x26   : > { %v381_v43 = vsel %vm291_vm0, %v1233_v6, %v373_v42  ;;  %v543_v54 = vsel %vm291_vm0, %v1601_v1, %v535_v48  ;;  %v286_v58 = vrot.slane %v1223_v55, 4  ;;  %v1244_v1 = vld [vmem:[%s1727_s11 + $0x14] sm:$0xf]  ;;  %v441_v14 = vrot.slane %v1240_v59, 4  ;;  %v1227_v42 = vld [vmem:[%s1727_s11 + $0x8] sm:$0xf] }
  0x27   : > { %v462_v53 = vsel %vm291_vm0, %v1598_v0, %v454_v47  ;;  %v1221_v0 = vld [vmem:[%s1727_s11 + $0x4] sm:$0xf]  ;;  %v1305_v47 = vld [vmem:[%s1727_s11 + $0x38] sm:$0xf]  ;;  %v1274_v59 = vld [vmem:[%s1727_s11 + $0x28] sm:$0xf] }
  0x28   : > { %v295_v63 = vsel %vm291_vm0, %v1617_v7, %v286_v58  ;;  %v459_v41 = vsel %vm291_vm0, %v1631_v11, %v441_v14  ;;  %v360_v11 = vrot.slane %v1227_v42, 4  ;;  %v1287_v14 = vld [vmem:[%s1727_s11 + $0x30] sm:$0xf]  ;;  %s1436_s9 = sshra.s32 %s932_s7, 4  ;;  %s1437_s9 = int_to_ptr.hbm [resolvable:$true] %s1436_s9 }
  0x29   : > { %s1438_s18 = scalar_lea.hbm %s1437_s9, 64  ;;  %p1443_p1 = scmp.lt.s32.totalorder %s1437_s9, %s1946_s3 }
  0x2a   : > { %1393 = vrot.lane.b32.xlu0 %v1392_v18, %s1502_s8  ;;  %1398 = vrot.lane.b32.xlu1 %v1397_v19, %s1502_s8  ;;  %v1300_v18 = vld [vmem:[%s1727_s11 + $0x38] sm:$0xf]  ;;  %p1439_p12 = scmp.ne.s32.totalorder %s1437_s9, %s1438_s18  ;;  %p1444_p2 = scmp.lt.s32.totalorder %s1442_s12, %s1438_s18 }
  0x2b   : > { %781 = vrot.lane.b32.xlu2 %v1659_v20, %s1502_s8 }
  0x2c   : > { %p1440_p13 = pnand %p1439_p12, %p1570_p4  ;;  %p1445_p3 = por %p1444_p2, %p1443_p1 }
  0x2e   : > { %p1441_p0 = pneg %p1440_p13 }
  0x30   : > { %p1446_p5 = pnand %p1445_p3, %p1441_p0 }
  0x32   : > { %619 = vrot.lane.b32.xlu0 %v1672_v25, %s1502_s8  ;;  %862 = vrot.lane.b32.xlu1 %v1675_v26, %s1502_s8 }
  0x33   : > { %1403 = vrot.lane.b32.xlu2 %v1402_v29, %s1502_s8 }
  0x3a   : > { %700 = vrot.lane.b32.xlu0 %v1701_v34, %s1502_s8  ;;  %1408 = vrot.lane.b32.xlu1 %v1407_v32, %s1502_s8  ;;  %v259_v32 = vld [vmem:[%s1727_s11] sm:$0xf] }
  0x3b   : > { %1413 = vrot.lane.b32.xlu2 %v1412_v36, %s1502_s8  ;;  %v273_v3 = vrot.slane %v259_v32, 4  ;;  %v1292_v32 = vld [vmem:[%s1727_s11 + $0x30] sm:$0xf] }
  0x42   : > { %1418 = vrot.lane.b32.xlu0 %v1417_v39, %s1502_s8  ;;  %v778_v39 = vrot.slane %v1300_v18, 4  ;;  %s908_s8 = scalar_lea.sflag [#allocation3], %s220_s14 }
  0x75   : > { %v377_v40 = vpop.permute.xlu2 %376 }
  0x76   : > { %1236 = vmatpush.msk.msra.mxu1 %vm291_vm0, %v377_v40  ;;  %v1279_v40 = vld [vmem:[%s1727_s11 + $0x28] sm:$0xf] }
  0x78   : > { %396 = vmatpush.msra.mxu1 %v381_v43  ;;  %v1253_v43 = vld [vmem:[%s1727_s11 + $0x18] sm:$0xf] }
  0x7d   : > { %v1389_v44 = vpop.permute.xlu2 %1388 }
  0x7e   : > { %v1391_v49 = vunpack.i.h.bf16 %v1389_v44  ;;  %v1390_v60 = vunpack.i.l.bf16 %v1389_v44  ;;  %v684_v44 = vrot.slane %v1279_v40, 4  ;;  %v765_v40 = vrot.slane %v1292_v32, 4 }
  0x80   : > { %v542_v57 = vsel %vm291_vm0, %v1257_v50, %v1391_v49  ;;  %v460_v7 = vsel %vm291_vm0, %v1390_v60, %v448_v5  ;;  %v1296_v5 = vld [vmem:[%s1727_s11 + $0x34] sm:$0xf]  ;;  %v1767_v46 = vsel %vm291_vm0, %v1713_v37, %v684_v44  ;;  %v1231_v49 = vld [vmem:[%s1727_s11 + $0xc] sm:$0xf]  ;;  %v1776_v37 = vld [vmem:[%s1943_s0] sm:$0xff]  ;;  %v292_v60 = vsel %vm291_vm0, %v1642_v15, %v273_v3 }
  0x81   : > { %v1309_v44 = vld [vmem:[%s1727_s11 + $0x3c] sm:$0xf] }
  0x85   : > { %v782_v56 = vpop.permute.xlu2 %781 }
  0x8c   : > { %v458_v51 = vpop.permute.xlu0 %457  ;;  %v539_v52 = vpop.permute.xlu1 %538 }
  0x8d   : > { %1249 = vmatpush.msk.msra.mxu2 %vm291_vm0, %v458_v51  ;;  %1262 = vmatpush.msk.msra.mxu3 %vm291_vm0, %v539_v52  ;;  %v1756_v36 = vpop.permute.xlu2 %1403  ;;  %v522_v51 = vrot.slane %v1253_v43, 4  ;;  %v786_v52 = vsel %vm291_vm0, %v1659_v20, %v778_v39 }
  0x8e   : > { %v1405_v45 = vunpack.i.l.bf16 %v1756_v36  ;;  %v1406_v9 = vunpack.i.h.bf16 %v1756_v36 }
  0x8f   : > { %477 = vmatpush.msra.mxu2 %v462_v53  ;;  %558 = vmatpush.msra.mxu3 %v543_v54  ;;  %v846_v53 = vrot.slane %v1305_v47, 4  ;;  %v540_v2 = vsel %vm291_vm0, %v1648_v17, %v522_v51 }
  0x90   : > { %v785_v20 = vsel %vm291_vm0, %v1296_v5, %v1405_v45  ;;  %v783_v45 = vsel %vm291_vm0, %v1690_v30, %v765_v40 }
  0x91   : > { %559 = vmatpush.msra.mxu3 %v542_v57 }
  0x94   : > { %v290_v61 = vpop.permute.xlu0 %289  ;;  %v1384_v62 = vpop.permute.xlu1 %1383 }
  0x95   : > { %1224 = vmatpush.msk.msra.mxu0 %vm291_vm0, %v290_v61  ;;  %v1386_v6 = vunpack.i.h.bf16 %v1384_v62  ;;  %v1385_v8 = vunpack.i.l.bf16 %v1384_v62  ;;  %v1313_v61 = vld [vmem:[%s1727_s11 + $0x40] sm:$0xf]  ;;  %v1788_v62 = vsel %vm291_vm0, %v1716_v38, %v846_v53  ;;  %v616_v38 = vrot.slane %v1274_v59, 4  ;;  %v1414_v10 = vpop.permute.xlu2 %1413 }
  0x96   : > { %v1416_v36 = vunpack.i.h.bf16 %v1414_v10 }
  0x97   : > { %314 = vmatpush.msra.mxu0 %v295_v63  ;;  %v294_v19 = vsel %vm291_vm0, %v1221_v0, %v1386_v6  ;;  %v461_v29 = vsel %vm291_vm0, %v1244_v1, %v1385_v8  ;;  %v1266_v1 = vld [vmem:[%s1727_s11 + $0x20] sm:$0xf]  ;;  %v624_v6 = vsel %vm291_vm0, %v1672_v25, %v616_v38  ;;  %v1415_v8 = vunpack.i.l.bf16 %v1414_v10 }
  0x98   : > { %478 = vmatpush.msra.mxu2 %v461_v29  ;;  %v603_v29 = vrot.slane %v1266_v1, 4 }
  0x99   : > { %315 = vmatpush.msra.mxu0 %v294_v19  ;;  %v622_v25 = vsel %vm291_vm0, %v1415_v8, %v610_v23 }
  0x9a   : > { %479 = vmatpush.msra.mxu2 %v460_v7  ;;  %v697_v7 = vrot.slane %v1287_v14, 4  ;;  %v621_v39 = vsel %vm291_vm0, %v1704_v35, %v603_v29 }
  0x9c   : > { %v1394_v48 = vpop.permute.xlu0 %1393  ;;  %v1399_v50 = vpop.permute.xlu1 %1398  ;;  %480 = vmatpush.msra.mxu2 %v459_v41  ;;  %v705_v43 = vsel %vm291_vm0, %v1701_v34, %v697_v7 }
  0x9d   : > { %v1396_v54 = vunpack.i.h.bf16 %v1394_v48  ;;  %v1395_v55 = vunpack.i.l.bf16 %v1394_v48  ;;  %v1401_v57 = vunpack.i.h.bf16 %v1399_v50  ;;  %v1400_v58 = vunpack.i.l.bf16 %v1399_v50  ;;  %1250 = vmatmul.msk.f32.vlgmr.msra.gmra.mxu2 %vm296_vm1, %v1776_v37 }
  0x9e   : > { %1301 = vmatpush.msk.msrb.mxu2 %vm291_vm0, %v782_v56 }
  0x9f   : > { %v293_v63 = vsel %vm291_vm0, %v1395_v55, %v280_v4  ;;  %v380_v56 = vsel %vm291_vm0, %v1231_v49, %v1396_v54  ;;  %v379_v15 = vsel %vm291_vm0, %v1401_v57, %v367_v13  ;;  %v541_v0 = vsel %vm291_vm0, %v1400_v58, %v529_v12  ;;  %v1270_v12 = vld [vmem:[%s1727_s11 + $0x24] sm:$0xf] }
  0xa0   : > { %801 = vmatpush.msrb.mxu2 %v786_v52  ;;  %316 = vmatpush.msra.mxu0 %v293_v63  ;;  %v378_v4 = vsel %vm291_vm0, %v1645_v16, %v360_v11  ;;  %v859_v13 = vrot.slane %v1313_v61, 4  ;;  %v623_v19 = vsel %vm291_vm0, %v1270_v12, %v1406_v9 }
  0xa1   : > { %397 = vmatpush.msra.mxu1 %v380_v56  ;;  %560 = vmatpush.msra.mxu3 %v541_v0 }
  0xa2   : > { %802 = vmatpush.msrb.mxu2 %v785_v20  ;;  %317 = vmatpush.msra.mxu0 %v292_v60  ;;  %v867_v18 = vsel %vm291_vm0, %v1675_v26, %v859_v13  ;;  %v1283_v26 = vld [vmem:[%s1727_s11 + $0x2c] sm:$0xf] }
  0xa3   : > { %398 = vmatpush.msra.mxu1 %v379_v15  ;;  %1225 = vmatmul.msk.f32.vlgmr.msra.gmra.mxu0 %vm296_vm1, %v1776_v37  ;;  %v704_v3 = vsel %vm291_vm0, %v1283_v26, %v1416_v36 }
  0xa4   : > { %561 = vmatpush.msra.mxu3 %v540_v2  ;;  %v620_v17 = vpop.permute.xlu0 %619  ;;  %v863_v16 = vpop.permute.xlu1 %862 }
  0xa5   : > { %399 = vmatpush.msra.mxu1 %v378_v4  ;;  %1263 = vmatmul.msk.f32.vlgmr.msra.gmra.mxu3 %vm296_vm1, %v1776_v37 }
  0xa6   : > { %1237 = vmatmul.msk.f32.vlgmr.msra.gmra.mxu1 %vm296_vm1, %v1776_v37  ;;  %1275 = vmatpush.msk.msrb.mxu0 %vm291_vm0, %v620_v17 }
  0xa7   : > { %1314 = vmatpush.msk.msrb.mxu3 %vm291_vm0, %v863_v16 }
  0xa8   : > { %639 = vmatpush.msrb.mxu0 %v624_v6 }
  0xa9   : > { %882 = vmatpush.msrb.mxu3 %v867_v18 }
  0xaa   : > { %640 = vmatpush.msrb.mxu0 %v623_v19 }
  0xac   : > { %641 = vmatpush.msrb.mxu0 %v622_v25  ;;  %v701_v41 = vpop.permute.xlu0 %700  ;;  %v1409_v42 = vpop.permute.xlu1 %1408 }
  0xad   : > { %1288 = vmatpush.msk.msrb.mxu1 %vm291_vm0, %v701_v41  ;;  %v1411_v21 = vunpack.i.h.bf16 %v1409_v42  ;;  %v1410_v23 = vunpack.i.l.bf16 %v1409_v42 }
  0xae   : > { %642 = vmatpush.msrb.mxu0 %v621_v39 }
  0xaf   : > { %1276 = vmatmul.msk.f32.vlgmr.msrb.gmra.mxu0 %vm296_vm1, %v1776_v37  ;;  %720 = vmatpush.msrb.mxu1 %v705_v43  ;;  %v784_v35 = vsel %vm291_vm0, %v1410_v23, %v772_v24  ;;  %v866_v34 = vsel %vm291_vm0, %v1309_v44, %v1411_v21 }
  0xb0   : > { %803 = vmatpush.msrb.mxu2 %v784_v35  ;;  %883 = vmatpush.msrb.mxu3 %v866_v34 }
  0xb1   : > { %721 = vmatpush.msrb.mxu1 %v704_v3 }
  0xb2   : > { %804 = vmatpush.msrb.mxu2 %v783_v45 }
  0xb3   : > { %1302 = vmatmul.msk.f32.vlgmr.msrb.gmra.mxu2 %vm296_vm1, %v1776_v37 }
  0xb4   : > { %v1419_v5 = vpop.permute.xlu0 %1418 }
  0xb5   : > { %v1421_v47 = vunpack.i.h.bf16 %v1419_v5  ;;  %v1420_v48 = vunpack.i.l.bf16 %v1419_v5 }
  0xb7   : > { %v703_v22 = vsel %vm291_vm0, %v1421_v47, %v691_v33  ;;  %v865_v24 = vsel %vm291_vm0, %v1420_v48, %v853_v28 }
  0xb8   : > { %722 = vmatpush.msrb.mxu1 %v703_v22  ;;  %884 = vmatpush.msrb.mxu3 %v865_v24 }
  0xba   : > { %723 = vmatpush.msrb.mxu1 %v1767_v46  ;;  %885 = vmatpush.msrb.mxu3 %v1788_v62 }
  0xbb   : > { %1289 = vmatmul.msk.f32.vlgmr.msrb.gmra.mxu1 %vm296_vm1, %v1776_v37  ;;  %1315 = vmatmul.msk.f32.vlgmr.msrb.gmra.mxu3 %vm296_vm1, %v1776_v37 }
 0x120   : > { %v319_v30 = vpop.f32.mrf.mxu0  ;;  %v482_v31 = vpop.f32.mrf.mxu2 }
 0x121   : > { %323 = vst.msk [vmem:[%s1858_s22] sm:$0xff] %vm322_vm2, %v319_v30  ;;  %v326_v27 = vsel %vm322_vm2, %v319_v30, 0.0  ;;  %v329_v28 = vmul.f32 %v319_v30, %v319_v30  ;;  %v489_v11 = vsel %vm322_vm2, %v482_v31, 0.0  ;;  %v492_v37 = vmul.f32 %v482_v31, %v482_v31 }
 0x122   : > { %327 = vadd.xlane.f32.xlu1 %v326_v27  ;;  %1251 = vst.msk [vmem:[%s1858_s22 + $0x10] sm:$0xff] %vm322_vm2, %v482_v31 }
 0x123   : > { %v401_v33 = vpop.f32.mrf.mxu1  ;;  %v330_v46 = vsel %vm322_vm2, %v329_v28, 0.0  ;;  %v493_v59 = vsel %vm322_vm2, %v492_v37, 0.0 }
 0x124   : > { %1238 = vst.msk [vmem:[%s1858_s22 + $0x8] sm:$0xff] %vm322_vm2, %v401_v33  ;;  %v408_v49 = vsel %vm322_vm2, %v401_v33, 0.0  ;;  %331 = vadd.xlane.f32.xlu2 %v330_v46  ;;  %v411_v50 = vmul.f32 %v401_v33, %v401_v33 }
 0x125   : > { %409 = vadd.xlane.f32.xlu0 %v408_v49 }
 0x126   : > { %v412_v52 = vsel %vm322_vm2, %v411_v50, 0.0 }
 0x128   : > { %v563_v51 = vpop.f32.mrf.mxu3 }
 0x129   : > { %1264 = vst.msk [vmem:[%s1858_s22 + $0x18] sm:$0xff] %vm322_vm2, %v563_v51  ;;  %v570_v53 = vsel %vm322_vm2, %v563_v51, 0.0  ;;  %v573_v54 = vmul.f32 %v563_v51, %v563_v51 }
 0x12a   : > { %490 = vadd.xlane.f32.xlu1 %v489_v11 }
 0x12b   : > { %v574_v58 = vsel %vm322_vm2, %v573_v54, 0.0 }
 0x12c   : > { %v644_v55 = vpop.f32.mrf.mxu0  ;;  %413 = vadd.xlane.f32.xlu2 %v412_v52 }
 0x12d   : > { %571 = vadd.xlane.f32.xlu0 %v570_v53  ;;  %1277 = vst.msk [vmem:[%s1858_s22 + $0x20] sm:$0xff] %vm322_vm2, %v644_v55  ;;  %v654_v57 = vmul.f32 %v644_v55, %v644_v55  ;;  %v651_v56 = vsel %vm322_vm2, %v644_v55, 0.0 }
 0x12f   : > { %v655_v60 = vsel %vm322_vm2, %v654_v57, 0.0 }
 0x132   : > { %575 = vadd.xlane.f32.xlu1 %v574_v58 }
 0x134   : > { %494 = vadd.xlane.f32.xlu2 %v493_v59 }
 0x135   : > { %656 = vadd.xlane.f32.xlu0 %v655_v60 }
 0x136   : > { %v806_v20 = vpop.f32.mrf.mxu2 }
 0x137   : > { %1303 = vst.msk [vmem:[%s1858_s22 + $0x30] sm:$0xff] %vm322_vm2, %v806_v20  ;;  %v813_v63 = vsel %vm322_vm2, %v806_v20, 0.0  ;;  %v816_v15 = vmul.f32 %v806_v20, %v806_v20 }
 0x138   : > { %v725_v61 = vpop.f32.mrf.mxu1 }
 0x139   : > { %1290 = vst.msk [vmem:[%s1858_s22 + $0x28] sm:$0xff] %vm322_vm2, %v725_v61  ;;  %v732_v62 = vsel %vm322_vm2, %v725_v61, 0.0  ;;  %v735_v0 = vmul.f32 %v725_v61, %v725_v61  ;;  %v817_v38 = vsel %vm322_vm2, %v816_v15, 0.0 }
 0x13a   : > { %733 = vadd.xlane.f32.xlu1 %v732_v62 }
 0x13b   : > { %v736_v10 = vsel %vm322_vm2, %v735_v0, 0.0 }
 0x13c   : > { %652 = vadd.xlane.f32.xlu2 %v651_v56 }
 0x13d   : > { %814 = vadd.xlane.f32.xlu0 %v813_v63 }
 0x13e   : > { %v887_v2 = vpop.f32.mrf.mxu3 }
 0x13f   : > { %1316 = vst.msk [vmem:[%s1858_s22 + $0x38] sm:$0xff] %vm322_vm2, %v887_v2  ;;  %v897_v4 = vmul.f32 %v887_v2, %v887_v2 }
 0x141   : > { %v898_v13 = vsel %vm322_vm2, %v897_v4, 0.0 }
 0x142   : > { %818 = vadd.xlane.f32.xlu1 %v817_v38 }
 0x144   : > { %737 = vadd.xlane.f32.xlu2 %v736_v10 }
 0x145   : > { %899 = vadd.xlane.f32.xlu0 %v898_v13 }
 0x146   : > { %1449 = shalt.err (!%p1446_p5)
}
 0x147   : > { %s1503_s14 = smov 128   ;;  %s1504_s22 = smov 8   ;;  %v894_v9 = vsel %vm322_vm2, %v887_v2, 0.0  ;;  %vm333_vm3 = vcmask 7168   ;;  %vm905_vm4 = vcmask 15360  }
 0x148   : > { %1324 = dma.vmem_to_hbm [thread:$0]  (%p1570_p4), %s930_s6, 1024, %s932_s7, %s908_s8, %s1503_s14, %s1503_s14, %s1504_s22  }
 0x149   : > { %s1219_s25 = sshll.u32 %s1587_s29, 3 }
 0x14a   : > { %s249_s30 = scalar_lea.vmem %s1947_s4, %s1219_s25 }
 0x14c   : > { %895 = vadd.xlane.f32.xlu2 %v894_v9 }
 0x195   : > { %v328_v12 = vpop.xlane.xlu1 %327 }
 0x197   : > { %v332_v1 = vpop.xlane.xlu2 %331 }
 0x198   : > { %v410_v17 = vpop.xlane.xlu0 %409  ;;  %v334_v25 = vsel %vm333_vm3, %v328_v12, %v332_v1 }
 0x19d   : > { %v491_v16 = vpop.xlane.xlu1 %490 }
 0x19f   : > { %v414_v6 = vpop.xlane.xlu2 %413 }
 0x1a0   : > { %v572_v8 = vpop.xlane.xlu0 %571  ;;  %v415_v29 = vsel %vm333_vm3, %v410_v17, %v414_v6 }
 0x1a1   : > { %v418_v36 = vadd.f32 %v415_v29, %v334_v25 }
 0x1a5   : > { %v576_v18 = vpop.xlane.xlu1 %575 }
 0x1a6   : > { %v577_v41 = vsel %vm333_vm3, %v572_v8, %v576_v18 }
 0x1a7   : > { %v495_v14 = vpop.xlane.xlu2 %494 }
 0x1a8   : > { %v657_v19 = vpop.xlane.xlu0 %656  ;;  %v496_v32 = vsel %vm333_vm3, %v491_v16, %v495_v14 }
 0x1a9   : > { %v499_v26 = vadd.f32 %v496_v32, %v418_v36 }
 0x1ab   : > { %v580_v43 = vadd.f32 %v577_v41, %v499_v26 }
 0x1ad   : > { %v734_v39 = vpop.xlane.xlu1 %733 }
 0x1af   : > { %v653_v7 = vpop.xlane.xlu2 %652 }
 0x1b0   : > { %v815_v40 = vpop.xlane.xlu0 %814  ;;  %v658_v42 = vsel %vm333_vm3, %v653_v7, %v657_v19 }
 0x1b1   : > { %v661_v23 = vadd.f32 %v658_v42, %v580_v43 }
 0x1b5   : > { %v819_v35 = vpop.xlane.xlu1 %818 }
 0x1b6   : > { %v820_v34 = vsel %vm333_vm3, %v815_v40, %v819_v35 }
 0x1b7   : > { %v738_v44 = vpop.xlane.xlu2 %737 }
 0x1b8   : > { %v739_v21 = vsel %vm333_vm3, %v734_v39, %v738_v44  ;;  %v900_v45 = vpop.xlane.xlu0 %899 }
 0x1b9   : > { %v742_v3 = vadd.f32 %v739_v21, %v661_v23 }
 0x1bb   : > { %v823_v5 = vadd.f32 %v820_v34, %v742_v3 }
 0x1bf   : > { %v896_v47 = vpop.xlane.xlu2 %895 }
 0x1c0   : > { %v901_v48 = vsel %vm333_vm3, %v896_v47, %v900_v45 }
 0x1c1   : > { %v904_v22 = vadd.f32 %v901_v48, %v823_v5 }
 0x1c3   : > { %906 = vst.msk [vmem:[%s249_s30] sm:$0xff] %vm905_vm4, %v904_v22 }
 0x1c4 PF: > { %p1330_p4 = scmp.ge.s32.totalorder %s1500_s20, 2  ;;  %s949_s5 = sand.u32 1, %s1480_s15  }
 0x1c5   : > { %s950_s29 = scalar_lea.sflag [#allocation3], %s949_s5 }
 0x1c6   : > { %p1327_p6 = pnand %p1330_p4, %p1577_p8 }
 0x1c8   : > { %p1328_p7 = pneg %p1327_p6 }
 0x1ca   : > { %1475 = dma.done.wait (%p1328_p7), %s950_s29, 1024  }
 0x1cb   : > { %1477 = vsyncadd (%p1328_p7), %s950_s29, 4294966272  ;;  %s18_s20 = sadd.s32 1, %s1500_s20   ;;  %s1950_s15 = smov %s1484_s16 }
 0x1cc   : > { %p15_p9 = scmp.ge.s32.totalorder %s18_s20, 4   ;;  %s1951_s16 = smov %s1488_s17 }
 0x1cd   : > { %s1952_s17 = smov %s1583_s28  ;;  %s1953_s18 = smov %s1496_s19 }
 0x1ce   : > { %s1954_s19 = smov %s1956_s23  ;;  %17 = sbr.rel (!%p15_p9) target bundleno = 4 (0x4), region = 137 }
 0x1d3   :  { %966 = vsyncpa [#allocation3], 1 }
 0x1d4   :  { %968 = vsyncpa [#allocation3 + $0x1], 1 }

</bundles_post_ra>
